<compile_context>
chip_gen: v7x
topology: tpu7x:2x2x1
jax: 0.10.0
libtpu: 0.0.40
codegen_flags: <defaults>
</compile_context>

<pallas_src>
import functools

import jax
import jax.numpy as jnp
from jax.experimental import pallas as pl
from jax.experimental.pallas import tpu as pltpu


ALIGN_PAD = 8  # scratch halo rows on each side of L; keeps the data store sublane-aligned


# ------------------------------ fused kernel ------------------------------ #

def _fused_encoder_kernel(x_ref, w1_ref, b1_ref, w2_ref, b2_ref,
                          w3_ref, b3_ref, w4_ref, b4_ref, o_ref,
                          xpad_ref, hpad_ref, h2_ref,
                          *, B, L, C_in, C1, C2, K, E, pad):
    f32 = jnp.float32
    A = ALIGN_PAD

    # ---------------- conv1 + ReLU: in-kernel zero padding + im2col ----------------
    for p in range(pad):  # only the halo rows the taps actually read
        xpad_ref[:, A - 1 - p:A - p, :] = jnp.zeros((B, 1, C_in), f32)
        xpad_ref[:, A + L + p:A + L + p + 1, :] = jnp.zeros((B, 1, C_in), f32)
    xpad_ref[:, A:A + L, :] = x_ref[...].astype(f32)           # aligned store (A, L mult of 8)

    cols1 = jnp.concatenate(
        [xpad_ref[:, A - pad + k:A - pad + k + L, :].reshape(B * L, C_in)
         for k in range(K)], axis=1)                            # (B*L, K*C_in)
    h1 = jnp.dot(cols1, w1_ref[...], preferred_element_type=f32)
    h1 = jnp.maximum(h1 + b1_ref[...], 0.0)                     # (B*L, C1)

    # ---------------- conv2 + ReLU ----------------
    for p in range(pad):
        hpad_ref[:, A - 1 - p:A - p, :] = jnp.zeros((B, 1, C1), f32)
        hpad_ref[:, A + L + p:A + L + p + 1, :] = jnp.zeros((B, 1, C1), f32)
    hpad_ref[:, A:A + L, :] = h1.reshape(B, L, C1)

    cols2 = jnp.concatenate(
        [hpad_ref[:, A - pad + k:A - pad + k + L, :].reshape(B * L, C1)
         for k in range(K)], axis=1)                            # (B*L, K*C1)
    h2 = jnp.dot(cols2, w2_ref[...], preferred_element_type=f32)
    h2 = jnp.maximum(h2 + b2_ref[...], 0.0)                     # (B*L, C2)

    # -------- flatten: (B, L, C2) -> (B, L*C2). fc1 weight rows were permuted at
    # init so this l-major / channel-minor order matches torch's x.view(batch, -1).
    h2_ref[...] = h2.reshape(B, L, C2)
    h2_flat = jnp.concatenate([h2_ref[:, l, :] for l in range(L)], axis=1)   # (B, L*C2)

    # ---------------- fc1 + ReLU, fc2 ----------------
    h3 = jnp.dot(h2_flat, w3_ref[...], preferred_element_type=f32)
    h3 = jnp.maximum(h3 + b3_ref[...], 0.0)                     # (B, E)
    out = jnp.dot(h3, w4_ref[...], preferred_element_type=f32) + b4_ref[...]
    o_ref[...] = out.astype(o_ref.dtype)                        # single (B, E) HBM store


# ------------------------------ JAX wrapper ------------------------------ #

def _round_up(x, m):
    return (x + m - 1) // m * m


@jax.jit
def conv_encoder_1d(x_ncl, fp):
    """Forward pass. x_ncl: (N, C_in, L) PyTorch NCL layout. Returns (N, E)."""
    N, C_in, L = x_ncl.shape
    K_Cin, C1 = fp["w1"].shape
    K = K_Cin // C_in
    C2 = fp["w2"].shape[1]
    E = fp["w4"].shape[1]
    pad = (K - 1) // 2

    # NCL -> NLC once at the input boundary (tiny one-time relayout, fused by XLA).
    x = jnp.transpose(x_ncl, (0, 2, 1)).astype(jnp.float32)     # (N, L, C_in)

    # Batch tile: multiple of 8 (sublane-friendly output), capped for VMEM headroom.
    B_TILE = min(512, _round_up(N, 8))
    N_pad = _round_up(N, B_TILE)
    if N_pad != N:
        x = jnp.pad(x, ((0, N_pad - N), (0, 0), (0, 0)))

    kernel = functools.partial(
        _fused_encoder_kernel,
        B=B_TILE, L=L, C_in=C_in, C1=C1, C2=C2, K=K, E=E, pad=pad)

    out = pl.pallas_call(
        kernel,
        out_shape=jax.ShapeDtypeStruct((N_pad, E), jnp.float32),
        grid=(N_pad // B_TILE,),
        in_specs=[
            pl.BlockSpec((B_TILE, L, C_in), lambda i: (i, 0, 0)),
            pl.BlockSpec(fp["w1"].shape, lambda i: (0, 0)),
            pl.BlockSpec(fp["b1"].shape, lambda i: (0, 0)),
            pl.BlockSpec(fp["w2"].shape, lambda i: (0, 0)),
            pl.BlockSpec(fp["b2"].shape, lambda i: (0, 0)),
            pl.BlockSpec(fp["w3"].shape, lambda i: (0, 0)),
            pl.BlockSpec(fp["b3"].shape, lambda i: (0, 0)),
            pl.BlockSpec(fp["w4"].shape, lambda i: (0, 0)),
            pl.BlockSpec(fp["b4"].shape, lambda i: (0, 0)),
        ],
        out_specs=pl.BlockSpec((B_TILE, E), lambda i: (i, 0)),
        scratch_shapes=[
            pltpu.VMEM((B_TILE, L + 2 * ALIGN_PAD, C_in), jnp.float32),  # padded conv1 input
            pltpu.VMEM((B_TILE, L + 2 * ALIGN_PAD, C1), jnp.float32),    # padded conv2 input
            pltpu.VMEM((B_TILE, L, C2), jnp.float32),                    # conv2 output
        ],
        compiler_params=pltpu.CompilerParams(
            dimension_semantics=("parallel",),        # batch tiles across TCs (v7x)
            vmem_limit_bytes=32 * 1024 * 1024,        # explicit, safe on v5e/v6e/v7x
        ),
    )(x, fp["w1"], fp["b1"], fp["w2"], fp["b2"],
      fp["w3"], fp["b3"], fp["w4"], fp["b4"])
    return out[:N]


# --------------------------- Parameters (PyTorch layout) --------------------------- #

def init_params(key):
    """Deterministic synthetic params in native PyTorch layouts."""
    ks = jax.random.split(key, 8)

    def winit(k, shape, fan_in):
        return jax.random.normal(k, shape, jnp.float32) / jnp.sqrt(fan_in)

    return {
        "conv1_w": winit(ks[0], (8, 4, 3), 4 * 3),     # (C_out, C_in, K)
        "conv1_b": winit(ks[1], (8,), 4 * 3),
        "conv2_w": winit(ks[2], (16, 8, 3), 8 * 3),
        "conv2_b": winit(ks[3], (16,), 8 * 3),
        "fc1_w": winit(ks[4], (32, 256), 256),         # (out, in), in index = c*L + l
        "fc1_b": winit(ks[5], (32,), 256),
        "fc2_w": winit(ks[6], (32, 32), 32),
        "fc2_b": winit(ks[7], (32,), 32),
    }


def fold_params(p):
    """One-time fold of PyTorch-layout weights into the kernel's fused layouts."""
    C1, C_in, K = p["conv1_w"].shape
    C2 = p["conv2_w"].shape[0]
    E1, F = p["fc1_w"].shape
    L = F // C2
    E2 = p["fc2_w"].shape[0]

    # conv weights: (C_out, C_in, K) -> (K*C_in, C_out), row index = k*C_in + c
    w1 = jnp.transpose(p["conv1_w"], (2, 1, 0)).reshape(K * C_in, C1)
    w2 = jnp.transpose(p["conv2_w"], (2, 1, 0)).reshape(K * C1, C2)
    # fc1: fold torch's channel-major flatten (c*L + l) into an l-major (l*C2 + c)
    # row order so the kernel's channels-last flatten feeds it directly.
    w3 = jnp.transpose(p["fc1_w"].T.reshape(C2, L, E1), (1, 0, 2)).reshape(L * C2, E1)
    w4 = p["fc2_w"].T
    return {
        "w1": w1, "b1": p["conv1_b"].reshape(1, C1),
        "w2": w2, "b2": p["conv2_b"].reshape(1, C2),
        "w3": w3, "b3": p["fc1_b"].reshape(1, E1),
        "w4": w4, "b4": p["fc2_b"].reshape(1, E2),
    }


# ------------------------------ pure-JAX reference ------------------------------ #

def reference_forward(x_ncl, p):
    hi = jax.lax.Precision.HIGHEST

    def conv1d(x, w, b):   # x (N, C_in, L), w (C_out, C_in, K), stride 1, pad (K-1)//2
        N, _, L = x.shape
        C_out, _, K = w.shape
        pad = (K - 1) // 2
        xp = jnp.pad(x, ((0, 0), (0, 0), (pad, pad)))
        out = jnp.zeros((N, C_out, L), jnp.float32)
        for k in range(K):
            out = out + jnp.einsum("oc,ncl->nol", w[:, :, k], xp[:, :, k:k + L],
                                   precision=hi)
        return out + b[None, :, None]

    h = jax.nn.relu(conv1d(x_ncl, p["conv1_w"], p["conv1_b"]))
    h = jax.nn.relu(conv1d(h, p["conv2_w"], p["conv2_b"]))
    hf = h.reshape(h.shape[0], -1)                                   # torch .view(batch, -1)
    h3 = jax.nn.relu(jnp.dot(hf, p["fc1_w"].T, precision=hi) + p["fc1_b"])
    return jnp.dot(h3, p["fc2_w"].T, precision=hi) + p["fc2_b"]


if __name__ == "__main__":
    key = jax.random.PRNGKey(0)
    k_x, k_p = jax.random.split(key)
    # PyTorch NCL input: batch=2, channels=4, length=16
    x = jax.random.normal(k_x, (2, 4, 16), jnp.float32)
    torch_layout_params = init_params(k_p)
    fp = fold_params(torch_layout_params)

    out = conv_encoder_1d(x, fp)
    jax.block_until_ready(out)
    assert out.shape == (2, 32)

    ref = reference_forward(x, torch_layout_params)
    max_err = float(jnp.max(jnp.abs(out - ref)))
    assert max_err < 1e-3, f"mismatch vs reference: max abs err {max_err}"
    print("KERNEL_OK")
</pallas_src>

<mosaic_0001>
module attributes {stable_mosaic.version = 11 : i64} {
  func.func @_fused_encoder_kernel(%arg0: i32, %arg1: memref<8x16x4xf32, #tpu.memory_space<vmem>>, %arg2: memref<12x8xf32, #tpu.memory_space<vmem>>, %arg3: memref<1x8xf32, #tpu.memory_space<vmem>>, %arg4: memref<24x16xf32, #tpu.memory_space<vmem>>, %arg5: memref<1x16xf32, #tpu.memory_space<vmem>>, %arg6: memref<256x32xf32, #tpu.memory_space<vmem>>, %arg7: memref<1x32xf32, #tpu.memory_space<vmem>>, %arg8: memref<32x32xf32, #tpu.memory_space<vmem>>, %arg9: memref<1x32xf32, #tpu.memory_space<vmem>>, %arg10: memref<8x32xf32, #tpu.memory_space<vmem>>, %arg11: memref<8x32x4xf32, #tpu.memory_space<vmem>>, %arg12: memref<8x32x8xf32, #tpu.memory_space<vmem>>, %arg13: memref<8x16x16xf32, #tpu.memory_space<vmem>>) attributes {dimension_semantics = [#tpu.dimension_semantics<parallel>], iteration_bounds = array<i64: 1>, scalar_prefetch = 0 : i64, scratch_operands = 3 : i64, tpu.core_type = #tpu.core_type<tc>, window_params = [{transform_indices = @transform_0, window_bounds = array<i64: 8, 16, 4>}, {pipeline_mode = #tpu.pipeline_mode<synchronous>, transform_indices = @transform_1, window_bounds = array<i64: 12, 8>}, {pipeline_mode = #tpu.pipeline_mode<synchronous>, transform_indices = @transform_2, window_bounds = array<i64: 1, 8>}, {pipeline_mode = #tpu.pipeline_mode<synchronous>, transform_indices = @transform_3, window_bounds = array<i64: 24, 16>}, {pipeline_mode = #tpu.pipeline_mode<synchronous>, transform_indices = @transform_4, window_bounds = array<i64: 1, 16>}, {pipeline_mode = #tpu.pipeline_mode<synchronous>, transform_indices = @transform_5, window_bounds = array<i64: 256, 32>}, {pipeline_mode = #tpu.pipeline_mode<synchronous>, transform_indices = @transform_6, window_bounds = array<i64: 1, 32>}, {pipeline_mode = #tpu.pipeline_mode<synchronous>, transform_indices = @transform_7, window_bounds = array<i64: 32, 32>}, {pipeline_mode = #tpu.pipeline_mode<synchronous>, transform_indices = @transform_8, window_bounds = array<i64: 1, 32>}, {transform_indices = @transform_9, window_bounds = array<i64: 8, 32>}]} {
    %cst = arith.constant 0.000000e+00 : f32
    %0 = vector.broadcast %cst : f32 to vector<8x1x4xf32>
    %c0 = arith.constant 0 : index
    %c7 = arith.constant 7 : index
    %c0_0 = arith.constant 0 : index
    %1 = vector.load %arg11[%c0, %c7, %c0_0] : memref<8x32x4xf32, #tpu.memory_space<vmem>>, vector<8x1x4xf32>
    tpu.vector_store %arg11[%c0, %c7, %c0_0], %0 {strides = array<i32>} : memref<8x32x4xf32, #tpu.memory_space<vmem>>, vector<8x1x4xf32>,
    %cst_1 = arith.constant 0.000000e+00 : f32
    %2 = vector.broadcast %cst_1 : f32 to vector<8x1x4xf32>
    %c0_2 = arith.constant 0 : index
    %c24 = arith.constant 24 : index
    %c0_3 = arith.constant 0 : index
    %3 = vector.load %arg11[%c0_2, %c24, %c0_3] : memref<8x32x4xf32, #tpu.memory_space<vmem>>, vector<8x1x4xf32>
    tpu.vector_store %arg11[%c0_2, %c24, %c0_3], %2 {strides = array<i32>} : memref<8x32x4xf32, #tpu.memory_space<vmem>>, vector<8x1x4xf32>,
    %c0_4 = arith.constant 0 : index
    %c0_5 = arith.constant 0 : index
    %c0_6 = arith.constant 0 : index
    %4 = vector.load %arg1[%c0_4, %c0_5, %c0_6] : memref<8x16x4xf32, #tpu.memory_space<vmem>>, vector<8x16x4xf32>
    %c0_7 = arith.constant 0 : index
    %c8 = arith.constant 8 : index
    %c0_8 = arith.constant 0 : index
    %5 = vector.load %arg11[%c0_7, %c8, %c0_8] : memref<8x32x4xf32, #tpu.memory_space<vmem>>, vector<8x16x4xf32>
    tpu.vector_store %arg11[%c0_7, %c8, %c0_8], %4 {strides = array<i32>} : memref<8x32x4xf32, #tpu.memory_space<vmem>>, vector<8x16x4xf32>,
    %c0_9 = arith.constant 0 : index
    %c7_10 = arith.constant 7 : index
    %c0_11 = arith.constant 0 : index
    %6 = vector.load %arg11[%c0_9, %c7_10, %c0_11] : memref<8x32x4xf32, #tpu.memory_space<vmem>>, vector<8x16x4xf32>
    %7 = vector.shape_cast %6 : vector<8x16x4xf32> to vector<128x4xf32>
    %c0_12 = arith.constant 0 : index
    %c8_13 = arith.constant 8 : index
    %c0_14 = arith.constant 0 : index
    %8 = vector.load %arg11[%c0_12, %c8_13, %c0_14] : memref<8x32x4xf32, #tpu.memory_space<vmem>>, vector<8x16x4xf32>
    %9 = vector.shape_cast %8 : vector<8x16x4xf32> to vector<128x4xf32>
    %c0_15 = arith.constant 0 : index
    %c9 = arith.constant 9 : index
    %c0_16 = arith.constant 0 : index
    %10 = vector.load %arg11[%c0_15, %c9, %c0_16] : memref<8x32x4xf32, #tpu.memory_space<vmem>>, vector<8x16x4xf32>
    %11 = vector.shape_cast %10 : vector<8x16x4xf32> to vector<128x4xf32>
    %12 = tpu.concatenate %7, %9, %11 in 1 : vector<128x4xf32>, vector<128x4xf32>, vector<128x4xf32> -> vector<128x12xf32>
    %c0_17 = arith.constant 0 : index
    %c0_18 = arith.constant 0 : index
    %13 = vector.load %arg2[%c0_17, %c0_18] : memref<12x8xf32, #tpu.memory_space<vmem>>, vector<12x8xf32>
    %cst_19 = arith.constant dense<0.000000e+00> : vector<128x8xf32>
    %14 = tpu.matmul %12, %13, %cst_19 {dimension_numbers = #tpu.dot_dimension_numbers<[1], [0], [0], [1], [0, 0, 1, 1], [], []>} : vector<128x12xf32>, vector<12x8xf32>, vector<128x8xf32> -> vector<128x8xf32>
    %c0_20 = arith.constant 0 : index
    %c0_21 = arith.constant 0 : index
    %15 = vector.load %arg3[%c0_20, %c0_21] : memref<1x8xf32, #tpu.memory_space<vmem>>, vector<1x8xf32>
    %16 = vector.broadcast %15 : vector<1x8xf32> to vector<128x8xf32>
    %17 = arith.addf %14, %16 : vector<128x8xf32>
    %cst_22 = arith.constant 0.000000e+00 : f32
    %18 = vector.broadcast %cst_22 : f32 to vector<128x8xf32>
    %19 = arith.maximumf %17, %18 : vector<128x8xf32>
    %cst_23 = arith.constant 0.000000e+00 : f32
    %20 = vector.broadcast %cst_23 : f32 to vector<8x1x8xf32>
    %c0_24 = arith.constant 0 : index
    %c7_25 = arith.constant 7 : index
    %c0_26 = arith.constant 0 : index
    %21 = vector.load %arg12[%c0_24, %c7_25, %c0_26] : memref<8x32x8xf32, #tpu.memory_space<vmem>>, vector<8x1x8xf32>
    tpu.vector_store %arg12[%c0_24, %c7_25, %c0_26], %20 {strides = array<i32>} : memref<8x32x8xf32, #tpu.memory_space<vmem>>, vector<8x1x8xf32>,
    %cst_27 = arith.constant 0.000000e+00 : f32
    %22 = vector.broadcast %cst_27 : f32 to vector<8x1x8xf32>
    %c0_28 = arith.constant 0 : index
    %c24_29 = arith.constant 24 : index
    %c0_30 = arith.constant 0 : index
    %23 = vector.load %arg12[%c0_28, %c24_29, %c0_30] : memref<8x32x8xf32, #tpu.memory_space<vmem>>, vector<8x1x8xf32>
    tpu.vector_store %arg12[%c0_28, %c24_29, %c0_30], %22 {strides = array<i32>} : memref<8x32x8xf32, #tpu.memory_space<vmem>>, vector<8x1x8xf32>,
    %24 = vector.shape_cast %19 : vector<128x8xf32> to vector<8x16x8xf32>
    %c0_31 = arith.constant 0 : index
    %c8_32 = arith.constant 8 : index
    %c0_33 = arith.constant 0 : index
    %25 = vector.load %arg12[%c0_31, %c8_32, %c0_33] : memref<8x32x8xf32, #tpu.memory_space<vmem>>, vector<8x16x8xf32>
    tpu.vector_store %arg12[%c0_31, %c8_32, %c0_33], %24 {strides = array<i32>} : memref<8x32x8xf32, #tpu.memory_space<vmem>>, vector<8x16x8xf32>,
    %c0_34 = arith.constant 0 : index
    %c7_35 = arith.constant 7 : index
    %c0_36 = arith.constant 0 : index
    %26 = vector.load %arg12[%c0_34, %c7_35, %c0_36] : memref<8x32x8xf32, #tpu.memory_space<vmem>>, vector<8x16x8xf32>
    %27 = vector.shape_cast %26 : vector<8x16x8xf32> to vector<128x8xf32>
    %c0_37 = arith.constant 0 : index
    %c8_38 = arith.constant 8 : index
    %c0_39 = arith.constant 0 : index
    %28 = vector.load %arg12[%c0_37, %c8_38, %c0_39] : memref<8x32x8xf32, #tpu.memory_space<vmem>>, vector<8x16x8xf32>
    %29 = vector.shape_cast %28 : vector<8x16x8xf32> to vector<128x8xf32>
    %c0_40 = arith.constant 0 : index
    %c9_41 = arith.constant 9 : index
    %c0_42 = arith.constant 0 : index
    %30 = vector.load %arg12[%c0_40, %c9_41, %c0_42] : memref<8x32x8xf32, #tpu.memory_space<vmem>>, vector<8x16x8xf32>
    %31 = vector.shape_cast %30 : vector<8x16x8xf32> to vector<128x8xf32>
    %32 = tpu.concatenate %27, %29, %31 in 1 : vector<128x8xf32>, vector<128x8xf32>, vector<128x8xf32> -> vector<128x24xf32>
    %c0_43 = arith.constant 0 : index
    %c0_44 = arith.constant 0 : index
    %33 = vector.load %arg4[%c0_43, %c0_44] : memref<24x16xf32, #tpu.memory_space<vmem>>, vector<24x16xf32>
    %cst_45 = arith.constant dense<0.000000e+00> : vector<128x16xf32>
    %34 = tpu.matmul %32, %33, %cst_45 {dimension_numbers = #tpu.dot_dimension_numbers<[1], [0], [0], [1], [0, 0, 1, 1], [], []>} : vector<128x24xf32>, vector<24x16xf32>, vector<128x16xf32> -> vector<128x16xf32>
    %c0_46 = arith.constant 0 : index
    %c0_47 = arith.constant 0 : index
    %35 = vector.load %arg5[%c0_46, %c0_47] : memref<1x16xf32, #tpu.memory_space<vmem>>, vector<1x16xf32>
    %36 = vector.broadcast %35 : vector<1x16xf32> to vector<128x16xf32>
    %37 = arith.addf %34, %36 : vector<128x16xf32>
    %cst_48 = arith.constant 0.000000e+00 : f32
    %38 = vector.broadcast %cst_48 : f32 to vector<128x16xf32>
    %39 = arith.maximumf %37, %38 : vector<128x16xf32>
    %40 = vector.shape_cast %39 : vector<128x16xf32> to vector<8x16x16xf32>
    %c0_49 = arith.constant 0 : index
    %c0_50 = arith.constant 0 : index
    %c0_51 = arith.constant 0 : index
    %41 = vector.load %arg13[%c0_49, %c0_50, %c0_51] : memref<8x16x16xf32, #tpu.memory_space<vmem>>, vector<8x16x16xf32>
    tpu.vector_store %arg13[%c0_49, %c0_50, %c0_51], %40 {strides = array<i32>} : memref<8x16x16xf32, #tpu.memory_space<vmem>>, vector<8x16x16xf32>,
    %c0_52 = arith.constant 0 : index
    %c0_53 = arith.constant 0 : index
    %c0_54 = arith.constant 0 : index
    %42 = vector.load %arg13[%c0_52, %c0_53, %c0_54] : memref<8x16x16xf32, #tpu.memory_space<vmem>>, vector<8x1x16xf32>
    %43 = vector.shape_cast %42 : vector<8x1x16xf32> to vector<8x16xf32>
    %c0_55 = arith.constant 0 : index
    %c1 = arith.constant 1 : index
    %c0_56 = arith.constant 0 : index
    %44 = vector.load %arg13[%c0_55, %c1, %c0_56] : memref<8x16x16xf32, #tpu.memory_space<vmem>>, vector<8x1x16xf32>
    %45 = vector.shape_cast %44 : vector<8x1x16xf32> to vector<8x16xf32>
    %c0_57 = arith.constant 0 : index
    %c2 = arith.constant 2 : index
    %c0_58 = arith.constant 0 : index
    %46 = vector.load %arg13[%c0_57, %c2, %c0_58] : memref<8x16x16xf32, #tpu.memory_space<vmem>>, vector<8x1x16xf32>
    %47 = vector.shape_cast %46 : vector<8x1x16xf32> to vector<8x16xf32>
    %c0_59 = arith.constant 0 : index
    %c3 = arith.constant 3 : index
    %c0_60 = arith.constant 0 : index
    %48 = vector.load %arg13[%c0_59, %c3, %c0_60] : memref<8x16x16xf32, #tpu.memory_space<vmem>>, vector<8x1x16xf32>
    %49 = vector.shape_cast %48 : vector<8x1x16xf32> to vector<8x16xf32>
    %c0_61 = arith.constant 0 : index
    %c4 = arith.constant 4 : index
    %c0_62 = arith.constant 0 : index
    %50 = vector.load %arg13[%c0_61, %c4, %c0_62] : memref<8x16x16xf32, #tpu.memory_space<vmem>>, vector<8x1x16xf32>
    %51 = vector.shape_cast %50 : vector<8x1x16xf32> to vector<8x16xf32>
    %c0_63 = arith.constant 0 : index
    %c5 = arith.constant 5 : index
    %c0_64 = arith.constant 0 : index
    %52 = vector.load %arg13[%c0_63, %c5, %c0_64] : memref<8x16x16xf32, #tpu.memory_space<vmem>>, vector<8x1x16xf32>
    %53 = vector.shape_cast %52 : vector<8x1x16xf32> to vector<8x16xf32>
    %c0_65 = arith.constant 0 : index
    %c6 = arith.constant 6 : index
    %c0_66 = arith.constant 0 : index
    %54 = vector.load %arg13[%c0_65, %c6, %c0_66] : memref<8x16x16xf32, #tpu.memory_space<vmem>>, vector<8x1x16xf32>
    %55 = vector.shape_cast %54 : vector<8x1x16xf32> to vector<8x16xf32>
    %c0_67 = arith.constant 0 : index
    %c7_68 = arith.constant 7 : index
    %c0_69 = arith.constant 0 : index
    %56 = vector.load %arg13[%c0_67, %c7_68, %c0_69] : memref<8x16x16xf32, #tpu.memory_space<vmem>>, vector<8x1x16xf32>
    %57 = vector.shape_cast %56 : vector<8x1x16xf32> to vector<8x16xf32>
    %c0_70 = arith.constant 0 : index
    %c8_71 = arith.constant 8 : index
    %c0_72 = arith.constant 0 : index
    %58 = vector.load %arg13[%c0_70, %c8_71, %c0_72] : memref<8x16x16xf32, #tpu.memory_space<vmem>>, vector<8x1x16xf32>
    %59 = vector.shape_cast %58 : vector<8x1x16xf32> to vector<8x16xf32>
    %c0_73 = arith.constant 0 : index
    %c9_74 = arith.constant 9 : index
    %c0_75 = arith.constant 0 : index
    %60 = vector.load %arg13[%c0_73, %c9_74, %c0_75] : memref<8x16x16xf32, #tpu.memory_space<vmem>>, vector<8x1x16xf32>
    %61 = vector.shape_cast %60 : vector<8x1x16xf32> to vector<8x16xf32>
    %c0_76 = arith.constant 0 : index
    %c10 = arith.constant 10 : index
    %c0_77 = arith.constant 0 : index
    %62 = vector.load %arg13[%c0_76, %c10, %c0_77] : memref<8x16x16xf32, #tpu.memory_space<vmem>>, vector<8x1x16xf32>
    %63 = vector.shape_cast %62 : vector<8x1x16xf32> to vector<8x16xf32>
    %c0_78 = arith.constant 0 : index
    %c11 = arith.constant 11 : index
    %c0_79 = arith.constant 0 : index
    %64 = vector.load %arg13[%c0_78, %c11, %c0_79] : memref<8x16x16xf32, #tpu.memory_space<vmem>>, vector<8x1x16xf32>
    %65 = vector.shape_cast %64 : vector<8x1x16xf32> to vector<8x16xf32>
    %c0_80 = arith.constant 0 : index
    %c12 = arith.constant 12 : index
    %c0_81 = arith.constant 0 : index
    %66 = vector.load %arg13[%c0_80, %c12, %c0_81] : memref<8x16x16xf32, #tpu.memory_space<vmem>>, vector<8x1x16xf32>
    %67 = vector.shape_cast %66 : vector<8x1x16xf32> to vector<8x16xf32>
    %c0_82 = arith.constant 0 : index
    %c13 = arith.constant 13 : index
    %c0_83 = arith.constant 0 : index
    %68 = vector.load %arg13[%c0_82, %c13, %c0_83] : memref<8x16x16xf32, #tpu.memory_space<vmem>>, vector<8x1x16xf32>
    %69 = vector.shape_cast %68 : vector<8x1x16xf32> to vector<8x16xf32>
    %c0_84 = arith.constant 0 : index
    %c14 = arith.constant 14 : index
    %c0_85 = arith.constant 0 : index
    %70 = vector.load %arg13[%c0_84, %c14, %c0_85] : memref<8x16x16xf32, #tpu.memory_space<vmem>>, vector<8x1x16xf32>
    %71 = vector.shape_cast %70 : vector<8x1x16xf32> to vector<8x16xf32>
    %c0_86 = arith.constant 0 : index
    %c15 = arith.constant 15 : index
    %c0_87 = arith.constant 0 : index
    %72 = vector.load %arg13[%c0_86, %c15, %c0_87] : memref<8x16x16xf32, #tpu.memory_space<vmem>>, vector<8x1x16xf32>
    %73 = vector.shape_cast %72 : vector<8x1x16xf32> to vector<8x16xf32>
    %74 = tpu.concatenate %43, %45, %47, %49, %51, %53, %55, %57, %59, %61, %63, %65, %67, %69, %71, %73 in 1 : vector<8x16xf32>, vector<8x16xf32>, vector<8x16xf32>, vector<8x16xf32>, vector<8x16xf32>, vector<8x16xf32>, vector<8x16xf32>, vector<8x16xf32>, vector<8x16xf32>, vector<8x16xf32>, vector<8x16xf32>, vector<8x16xf32>, vector<8x16xf32>, vector<8x16xf32>, vector<8x16xf32>, vector<8x16xf32> -> vector<8x256xf32>
    %c0_88 = arith.constant 0 : index
    %c0_89 = arith.constant 0 : index
    %75 = vector.load %arg6[%c0_88, %c0_89] : memref<256x32xf32, #tpu.memory_space<vmem>>, vector<256x32xf32>
    %cst_90 = arith.constant dense<0.000000e+00> : vector<8x32xf32>
    %76 = tpu.matmul %74, %75, %cst_90 {dimension_numbers = #tpu.dot_dimension_numbers<[1], [0], [0], [1], [0, 0, 1, 1], [], []>} : vector<8x256xf32>, vector<256x32xf32>, vector<8x32xf32> -> vector<8x32xf32>
    %c0_91 = arith.constant 0 : index
    %c0_92 = arith.constant 0 : index
    %77 = vector.load %arg7[%c0_91, %c0_92] : memref<1x32xf32, #tpu.memory_space<vmem>>, vector<1x32xf32>
    %78 = vector.broadcast %77 : vector<1x32xf32> to vector<8x32xf32>
    %79 = arith.addf %76, %78 : vector<8x32xf32>
    %cst_93 = arith.constant 0.000000e+00 : f32
    %80 = vector.broadcast %cst_93 : f32 to vector<8x32xf32>
    %81 = arith.maximumf %79, %80 : vector<8x32xf32>
    %c0_94 = arith.constant 0 : index
    %c0_95 = arith.constant 0 : index
    %82 = vector.load %arg8[%c0_94, %c0_95] : memref<32x32xf32, #tpu.memory_space<vmem>>, vector<32x32xf32>
    %cst_96 = arith.constant dense<0.000000e+00> : vector<8x32xf32>
    %83 = tpu.matmul %81, %82, %cst_96 {dimension_numbers = #tpu.dot_dimension_numbers<[1], [0], [0], [1], [0, 0, 1, 1], [], []>} : vector<8x32xf32>, vector<32x32xf32>, vector<8x32xf32> -> vector<8x32xf32>
    %c0_97 = arith.constant 0 : index
    %c0_98 = arith.constant 0 : index
    %84 = vector.load %arg9[%c0_97, %c0_98] : memref<1x32xf32, #tpu.memory_space<vmem>>, vector<1x32xf32>
    %85 = vector.broadcast %84 : vector<1x32xf32> to vector<8x32xf32>
    %86 = arith.addf %83, %85 : vector<8x32xf32>
    %c0_99 = arith.constant 0 : index
    %c0_100 = arith.constant 0 : index
    %87 = vector.load %arg10[%c0_99, %c0_100] : memref<8x32xf32, #tpu.memory_space<vmem>>, vector<8x32xf32>
    tpu.vector_store %arg10[%c0_99, %c0_100], %86 {strides = array<i32>} : memref<8x32xf32, #tpu.memory_space<vmem>>, vector<8x32xf32>,
    return
  }
  func.func @transform_0(%arg0: i32) -> (i32, i32, i32) {
    %c0_i32 = arith.constant 0 : i32
    %c0_i32_0 = arith.constant 0 : i32
    %c0_i32_1 = arith.constant 0 : i32
    return %arg0, %c0_i32, %c0_i32_0 : i32, i32, i32
  }
  func.func @transform_1(%arg0: i32) -> (i32, i32) {
    %c0_i32 = arith.constant 0 : i32
    %c0_i32_0 = arith.constant 0 : i32
    %c0_i32_1 = arith.constant 0 : i32
    return %c0_i32, %c0_i32_0 : i32, i32
  }
  func.func @transform_2(%arg0: i32) -> (i32, i32) {
    %c0_i32 = arith.constant 0 : i32
    %c0_i32_0 = arith.constant 0 : i32
    %c0_i32_1 = arith.constant 0 : i32
    return %c0_i32, %c0_i32_0 : i32, i32
  }
  func.func @transform_3(%arg0: i32) -> (i32, i32) {
    %c0_i32 = arith.constant 0 : i32
    %c0_i32_0 = arith.constant 0 : i32
    %c0_i32_1 = arith.constant 0 : i32
    return %c0_i32, %c0_i32_0 : i32, i32
  }
  func.func @transform_4(%arg0: i32) -> (i32, i32) {
    %c0_i32 = arith.constant 0 : i32
    %c0_i32_0 = arith.constant 0 : i32
    %c0_i32_1 = arith.constant 0 : i32
    return %c0_i32, %c0_i32_0 : i32, i32
  }
  func.func @transform_5(%arg0: i32) -> (i32, i32) {
    %c0_i32 = arith.constant 0 : i32
    %c0_i32_0 = arith.constant 0 : i32
    %c0_i32_1 = arith.constant 0 : i32
    return %c0_i32, %c0_i32_0 : i32, i32
  }
  func.func @transform_6(%arg0: i32) -> (i32, i32) {
    %c0_i32 = arith.constant 0 : i32
    %c0_i32_0 = arith.constant 0 : i32
    %c0_i32_1 = arith.constant 0 : i32
    return %c0_i32, %c0_i32_0 : i32, i32
  }
  func.func @transform_7(%arg0: i32) -> (i32, i32) {
    %c0_i32 = arith.constant 0 : i32
    %c0_i32_0 = arith.constant 0 : i32
    %c0_i32_1 = arith.constant 0 : i32
    return %c0_i32, %c0_i32_0 : i32, i32
  }
  func.func @transform_8(%arg0: i32) -> (i32, i32) {
    %c0_i32 = arith.constant 0 : i32
    %c0_i32_0 = arith.constant 0 : i32
    %c0_i32_1 = arith.constant 0 : i32
    return %c0_i32, %c0_i32_0 : i32, i32
  }
  func.func @transform_9(%arg0: i32) -> (i32, i32) {
    %c0_i32 = arith.constant 0 : i32
    %c0_i32_0 = arith.constant 0 : i32
    return %arg0, %c0_i32 : i32, i32
  }
}

</mosaic_0001>

<bundles_post_ra>
// kernel: conv_encoder_1d.1
= control target key start
LH: loop header
LB: loop body
LE: loop exit
PB: predicated region body
PF: predicated region fallthrough
CT: control target
= control target key end

     0   :  { %vm65_vm0 = vcmask 31744   ;;  %vm32_vm1 = vcmask 24576   ;;  %v2022_v2 = vmov 0.0   ;;  %vm349_vm2 = vcmask 1043456   ;;  %s2024_s24 = smov 8   ;;  %s2029_s26 = smov 48   ;;  %s2747_s0 = inlined_call_operand.vmem [shape: f32[8,16,4], index: 0, kind: input, shape index: {}]   ;;  %s2748_s1 = inlined_call_operand.vmem [shape: f32[12,8], index: 1, kind: input, shape index: {}]   ;;  %s2749_s2 = inlined_call_operand.vmem [shape: f32[1,8], index: 2, kind: input, shape index: {}]   ;;  %s2750_s3 = inlined_call_operand.vmem [shape: f32[24,16], index: 3, kind: input, shape index: {}]   ;;  %s2751_s5 = inlined_call_operand.vmem [shape: f32[256,32], index: 5, kind: input, shape index: {}]   ;;  %s2752_s4 = inlined_call_operand.vmem [shape: f32[1,16], index: 4, kind: input, shape index: {}]   ;;  %s2753_s7 = inlined_call_operand.vmem [shape: f32[32,32], index: 7, kind: input, shape index: {}]   ;;  %s2754_s6 = inlined_call_operand.vmem [shape: f32[1,32], index: 6, kind: input, shape index: {}]   ;;  %s2755_s8 = inlined_call_operand.vmem [shape: f32[1,32], index: 8, kind: input, shape index: {}]   ;;  %s2756_s9 = inlined_call_operand.vmem [shape: f32[8,32], index: 9, kind: output, shape index: {}]  }
   0x1   :  { %v49_v0 = vld [vmem:[%s2747_s0] sm:$0xff]  ;;  %v50_v1 = vld [vmem:[%s2747_s0 + $0x8] sm:$0xff]  ;;  %41 = vst.msk [vmem:[#allocation2 + $0x18] sm:$0x1] %vm32_vm1, %v2022_v2  ;;  %33 = vst.msk [vmem:[#allocation2 + $0x7] sm:$0x1] %vm32_vm1, %v2022_v2 }
   0x2   :  { %34 = vst.msk [vmem:[#allocation2 + $0x27] sm:$0x1] %vm32_vm1, %v2022_v2  ;;  %35 = vst.msk [vmem:[#allocation2 + $0x47] sm:$0x1] %vm32_vm1, %v2022_v2  ;;  %v52_v3 = vld [vmem:[%s2747_s0 + $0x18] sm:$0xff]  ;;  %v51_v4 = vld [vmem:[%s2747_s0 + $0x10] sm:$0xff] }
   0x3   :  { %36 = vst.msk [vmem:[#allocation2 + $0x67] sm:$0x1] %vm32_vm1, %v2022_v2  ;;  %37 = vst.msk [vmem:[#allocation2 + $0x87] sm:$0x1] %vm32_vm1, %v2022_v2  ;;  %v54_v5 = vld [vmem:[%s2747_s0 + $0x28] sm:$0xff]  ;;  %v53_v6 = vld [vmem:[%s2747_s0 + $0x20] sm:$0xff] }
   0x4   :  { %38 = vst.msk [vmem:[#allocation2 + $0xa7] sm:$0x1] %vm32_vm1, %v2022_v2  ;;  %39 = vst.msk [vmem:[#allocation2 + $0xc7] sm:$0x1] %vm32_vm1, %v2022_v2  ;;  %v56_v7 = vld [vmem:[%s2747_s0 + $0x38] sm:$0xff]  ;;  %v55_v8 = vld [vmem:[%s2747_s0 + $0x30] sm:$0xff] }
   0x5   :  { %40 = vst.msk [vmem:[#allocation2 + $0xe7] sm:$0x1] %vm32_vm1, %v2022_v2  ;;  %42 = vst.msk [vmem:[#allocation2 + $0x38] sm:$0x1] %vm32_vm1, %v2022_v2  ;;  %v58_v9 = vld [vmem:[%s2747_s0 + $0x48] sm:$0xff]  ;;  %v57_v10 = vld [vmem:[%s2747_s0 + $0x40] sm:$0xff] }
   0x6   :  { %43 = vst.msk [vmem:[#allocation2 + $0x58] sm:$0x1] %vm32_vm1, %v2022_v2  ;;  %44 = vst.msk [vmem:[#allocation2 + $0x78] sm:$0x1] %vm32_vm1, %v2022_v2  ;;  %v60_v11 = vld [vmem:[%s2747_s0 + $0x58] sm:$0xff]  ;;  %v59_v12 = vld [vmem:[%s2747_s0 + $0x50] sm:$0xff] }
   0x7   :  { %45 = vst.msk [vmem:[#allocation2 + $0x98] sm:$0x1] %vm32_vm1, %v2022_v2  ;;  %46 = vst.msk [vmem:[#allocation2 + $0xb8] sm:$0x1] %vm32_vm1, %v2022_v2  ;;  %v62_v13 = vld [vmem:[%s2747_s0 + $0x68] sm:$0xff]  ;;  %v61_v14 = vld [vmem:[%s2747_s0 + $0x60] sm:$0xff] }
   0x8   :  { %47 = vst.msk [vmem:[#allocation2 + $0xd8] sm:$0x1] %vm32_vm1, %v2022_v2  ;;  %48 = vst.msk [vmem:[#allocation2 + $0xf8] sm:$0x1] %vm32_vm1, %v2022_v2  ;;  %v64_v15 = vld [vmem:[%s2747_s0 + $0x78] sm:$0xff]  ;;  %v63_v16 = vld [vmem:[%s2747_s0 + $0x70] sm:$0xff] }
   0x9   :  { %66 = vst.msk [vmem:[#allocation2 + $0x8] sm:$0xff] %vm65_vm0, %v49_v0  ;;  %67 = vst.msk [vmem:[#allocation2 + $0x10] sm:$0xff] %vm65_vm0, %v50_v1  ;;  %v291_v17 = vld [vmem:[%s2748_s1] sm:$0xff]  ;;  %v292_v18 = vld [vmem:[%s2748_s1 + $0x8] sm:$0xf]  ;;  %vm2023_vm3 = vmmov 1  }
   0xa   :  { %69 = vst.msk [vmem:[#allocation2 + $0x30] sm:$0xff] %vm65_vm0, %v52_v3  ;;  %68 = vst.msk [vmem:[#allocation2 + $0x28] sm:$0xff] %vm65_vm0, %v51_v4  ;;  %v1926_v19 = vpack.c.bf16 %v292_v18, %v291_v17  ;;  %s2025_s0 = smov 4   ;;  %vm274_vm5 = vcmask 64512   ;;  %vm300_vm6 = vcmask 97280   ;;  %vm514_vm7 = vcmask 57344  }
   0xb   :  { %71 = vst.msk [vmem:[#allocation2 + $0x50] sm:$0xff] %vm65_vm0, %v54_v5  ;;  %70 = vst.msk [vmem:[#allocation2 + $0x48] sm:$0xff] %vm65_vm0, %v53_v6  ;;  %vm739_vm8 = vcmask 130048   ;;  %vm766_vm9 = vcmask 195584   ;;  %vm1129_vm10 = vcmask 1041409   ;;  %vm1132_vm11 = vcmask 1042434  }
   0xc   :  { %73 = vst.msk [vmem:[#allocation2 + $0x70] sm:$0xff] %vm65_vm0, %v56_v7  ;;  %72 = vst.msk [vmem:[#allocation2 + $0x68] sm:$0xff] %vm65_vm0, %v55_v8  ;;  %vm1135_vm12 = vcmask 1043459   ;;  %vm1138_vm13 = vcmask 1044484   ;;  %vm1141_vm14 = vcmask 1045509   ;;  %vm1144_vm15 = vcmask 1046534  }
   0xd   :  { %75 = vst.msk [vmem:[#allocation2 + $0x90] sm:$0xff] %vm65_vm0, %v58_v9  ;;  %74 = vst.msk [vmem:[#allocation2 + $0x88] sm:$0xff] %vm65_vm0, %v57_v10  ;;  %s2030_s30 = smov 96   ;;  %s2031_s10 = smov 80   ;;  %vm1524_vm1 = vcmask 261120  }
   0xe   :  { %77 = vst.msk [vmem:[#allocation2 + $0xb0] sm:$0xff] %vm65_vm0, %v60_v11  ;;  %76 = vst.msk [vmem:[#allocation2 + $0xa8] sm:$0xff] %vm65_vm0, %v59_v12  ;;  %s2032_s1 = smov 112  }
   0xf   :  { %79 = vst.msk [vmem:[#allocation2 + $0xd0] sm:$0xff] %vm65_vm0, %v62_v13  ;;  %78 = vst.msk [vmem:[#allocation2 + $0xc8] sm:$0xff] %vm65_vm0, %v61_v14 }
  0x10   :  { %81 = vst.msk [vmem:[#allocation2 + $0xf0] sm:$0xff] %vm65_vm0, %v64_v15  ;;  %80 = vst.msk [vmem:[#allocation2 + $0xe8] sm:$0xff] %vm65_vm0, %v63_v16  ;;  %v114_v20 = vld [vmem:[#allocation2 + $0x9] sm:$0xff]  ;;  %v115_v22 = vld [vmem:[#allocation2 + $0x11] sm:$0xff] }
  0x11   :  { %vm1927_vm4 = vmpackc.low %vm349_vm2, %vm2023_vm3  ;;  %v98_v21 = vld [vmem:[#allocation2 + $0x8] sm:$0xff]  ;;  %210 = vrot.lane.b32.xlu1 %v114_v20, %s2024_s24  ;;  %v99_v23 = vld [vmem:[#allocation2 + $0x10] sm:$0xff]  ;;  %523 = vst.msk [vmem:[#allocation3 + $0x18] sm:$0x1] %vm514_vm7, %v2022_v2  ;;  %vm1526_vm2 = vcmask 392192   ;;  %vm1528_vm3 = vcmask 523264  }
  0x12   :  { %1928 = vmatprep.subr.msk.bf16.mxu0 %vm1927_vm4, %v1926_v19  ;;  %146 = vrot.lane.b32.xlu0 %v98_v21, %s2025_s0  ;;  %v101_v24 = vld [vmem:[#allocation2 + $0x30] sm:$0xff]  ;;  %v100_v25 = vld [vmem:[#allocation2 + $0x28] sm:$0xff]  ;;  %515 = vst.msk [vmem:[#allocation3 + $0x7] sm:$0x1] %vm514_vm7, %v2022_v2  ;;  %516 = vst.msk [vmem:[#allocation3 + $0x27] sm:$0x1] %vm514_vm7, %v2022_v2 }
  0x13   :  { %1931 = vmatpush3.bf16.msk.msra.mxu0 %vm1927_vm4, %v1926_v19  ;;  %v117_v26 = vld [vmem:[#allocation2 + $0x31] sm:$0xff]  ;;  %v116_v27 = vld [vmem:[#allocation2 + $0x29] sm:$0xff]  ;;  %517 = vst.msk [vmem:[#allocation3 + $0x47] sm:$0x1] %vm514_vm7, %v2022_v2  ;;  %518 = vst.msk [vmem:[#allocation3 + $0x67] sm:$0x1] %vm514_vm7, %v2022_v2 }
  0x14   :  { %v103_v28 = vld [vmem:[#allocation2 + $0x50] sm:$0xff]  ;;  %v102_v29 = vld [vmem:[#allocation2 + $0x48] sm:$0xff]  ;;  %519 = vst.msk [vmem:[#allocation3 + $0x87] sm:$0x1] %vm514_vm7, %v2022_v2  ;;  %520 = vst.msk [vmem:[#allocation3 + $0xa7] sm:$0x1] %vm514_vm7, %v2022_v2 }
  0x15   :  { %212 = vrot.lane.b32.xlu1 %v115_v22, %s2024_s24  ;;  %v119_v30 = vld [vmem:[#allocation2 + $0x51] sm:$0xff]  ;;  %v118_v31 = vld [vmem:[#allocation2 + $0x49] sm:$0xff]  ;;  %521 = vst.msk [vmem:[#allocation3 + $0xc7] sm:$0x1] %vm514_vm7, %v2022_v2  ;;  %522 = vst.msk [vmem:[#allocation3 + $0xe7] sm:$0x1] %vm514_vm7, %v2022_v2 }
  0x16   :  { %148 = vrot.lane.b32.xlu0 %v99_v23, %s2025_s0  ;;  %v105_v32 = vld [vmem:[#allocation2 + $0x70] sm:$0xff]  ;;  %v104_v33 = vld [vmem:[#allocation2 + $0x68] sm:$0xff]  ;;  %524 = vst.msk [vmem:[#allocation3 + $0x38] sm:$0x1] %vm514_vm7, %v2022_v2  ;;  %525 = vst.msk [vmem:[#allocation3 + $0x58] sm:$0x1] %vm514_vm7, %v2022_v2 }
  0x17   :  { %v121_v34 = vld [vmem:[#allocation2 + $0x71] sm:$0xff]  ;;  %v120_v35 = vld [vmem:[#allocation2 + $0x69] sm:$0xff]  ;;  %526 = vst.msk [vmem:[#allocation3 + $0x78] sm:$0x1] %vm514_vm7, %v2022_v2  ;;  %527 = vst.msk [vmem:[#allocation3 + $0x98] sm:$0x1] %vm514_vm7, %v2022_v2 }
  0x18   :  { %v107_v36 = vld [vmem:[#allocation2 + $0x90] sm:$0xff]  ;;  %v106_v37 = vld [vmem:[#allocation2 + $0x88] sm:$0xff]  ;;  %528 = vst.msk [vmem:[#allocation3 + $0xb8] sm:$0x1] %vm514_vm7, %v2022_v2  ;;  %529 = vst.msk [vmem:[#allocation3 + $0xd8] sm:$0x1] %vm514_vm7, %v2022_v2 }
  0x19   :  { %152 = vrot.lane.b32.xlu1 %v101_v24, %s2025_s0  ;;  %v123_v38 = vld [vmem:[#allocation2 + $0x91] sm:$0xff]  ;;  %v122_v39 = vld [vmem:[#allocation2 + $0x89] sm:$0xff]  ;;  %530 = vst.msk [vmem:[#allocation3 + $0xf8] sm:$0x1] %vm514_vm7, %v2022_v2  ;;  %vm1530_vm4 = vcmask 654336   ;;  %vm2034_vm7 = vmmov 0  }
  0x1a   :  { %150 = vrot.lane.b32.xlu0 %v100_v25, %s2025_s0  ;;  %v109_v40 = vld [vmem:[#allocation2 + $0xb0] sm:$0xff]  ;;  %v108_v41 = vld [vmem:[#allocation2 + $0xa8] sm:$0xff] }
  0x1b   :  { %v125_v42 = vld [vmem:[#allocation2 + $0xb1] sm:$0xff]  ;;  %v124_v43 = vld [vmem:[#allocation2 + $0xa9] sm:$0xff] }
  0x1c   :  { %v111_v44 = vld [vmem:[#allocation2 + $0xd0] sm:$0xff]  ;;  %v110_v45 = vld [vmem:[#allocation2 + $0xc8] sm:$0xff] }
  0x1d   :  { %216 = vrot.lane.b32.xlu1 %v117_v26, %s2024_s24  ;;  %v127_v46 = vld [vmem:[#allocation2 + $0xd1] sm:$0xff]  ;;  %v126_v47 = vld [vmem:[#allocation2 + $0xc9] sm:$0xff] }
  0x1e   :  { %214 = vrot.lane.b32.xlu0 %v116_v27, %s2024_s24  ;;  %v113_v48 = vld [vmem:[#allocation2 + $0xf0] sm:$0xff]  ;;  %v112_v49 = vld [vmem:[#allocation2 + $0xe8] sm:$0xff] }
  0x1f   :  { %v129_v50 = vld [vmem:[#allocation2 + $0xf1] sm:$0xff]  ;;  %v128_v51 = vld [vmem:[#allocation2 + $0xe9] sm:$0xff] }
  0x20   :  { %v82_v52 = vld [vmem:[#allocation2 + $0x7] sm:$0xff]  ;;  %v83_v57 = vld [vmem:[#allocation2 + $0xf] sm:$0xff] }
  0x21   :  { %156 = vrot.lane.b32.xlu1 %v103_v28, %s2025_s0  ;;  %v85_v0 = vld [vmem:[#allocation2 + $0x2f] sm:$0xff]  ;;  %v84_v1 = vld [vmem:[#allocation2 + $0x27] sm:$0xff] }
  0x22   :  { %154 = vrot.lane.b32.xlu0 %v102_v29, %s2025_s0  ;;  %v87_v11 = vld [vmem:[#allocation2 + $0x4f] sm:$0xff]  ;;  %v86_v12 = vld [vmem:[#allocation2 + $0x47] sm:$0xff] }
  0x23   :  { %v89_v21 = vld [vmem:[#allocation2 + $0x6f] sm:$0xff]  ;;  %v88_v22 = vld [vmem:[#allocation2 + $0x67] sm:$0xff] }
  0x25   :  { %220 = vrot.lane.b32.xlu1 %v119_v30, %s2024_s24 }
  0x26   :  { %218 = vrot.lane.b32.xlu0 %v118_v31, %s2024_s24  ;;  %v91_v31 = vld [vmem:[#allocation2 + $0x8f] sm:$0xff] }
  0x29   :  { %160 = vrot.lane.b32.xlu1 %v105_v32, %s2025_s0  ;;  %v90_v32 = vld [vmem:[#allocation2 + $0x87] sm:$0xff] }
  0x2a   :  { %158 = vrot.lane.b32.xlu0 %v104_v33, %s2025_s0 }
  0x2d   :  { %224 = vrot.lane.b32.xlu1 %v121_v34, %s2024_s24 }
  0x2e   :  { %222 = vrot.lane.b32.xlu0 %v120_v35, %s2024_s24 }
  0x31   :  { %164 = vrot.lane.b32.xlu1 %v107_v36, %s2025_s0 }
  0x32   :  { %162 = vrot.lane.b32.xlu0 %v106_v37, %s2025_s0 }
  0x35   :  { %228 = vrot.lane.b32.xlu1 %v123_v38, %s2024_s24 }
  0x36   :  { %226 = vrot.lane.b32.xlu0 %v122_v39, %s2024_s24 }
  0x39   :  { %168 = vrot.lane.b32.xlu1 %v109_v40, %s2025_s0 }
  0x3a   :  { %166 = vrot.lane.b32.xlu0 %v108_v41, %s2025_s0  ;;  %v93_v41 = vld [vmem:[#allocation2 + $0xaf] sm:$0xff] }
  0x3d   :  { %232 = vrot.lane.b32.xlu1 %v125_v42, %s2024_s24  ;;  %v92_v42 = vld [vmem:[#allocation2 + $0xa7] sm:$0xff] }
  0x3e   :  { %230 = vrot.lane.b32.xlu0 %v124_v43, %s2024_s24 }
  0x41   :  { %172 = vrot.lane.b32.xlu1 %v111_v44, %s2025_s0 }
  0x42   :  { %170 = vrot.lane.b32.xlu0 %v110_v45, %s2025_s0 }
  0x45   :  { %236 = vrot.lane.b32.xlu1 %v127_v46, %s2024_s24 }
  0x46   :  { %234 = vrot.lane.b32.xlu0 %v126_v47, %s2024_s24 }
  0x49   :  { %176 = vrot.lane.b32.xlu1 %v113_v48, %s2025_s0 }
  0x4a   :  { %174 = vrot.lane.b32.xlu0 %v112_v49, %s2025_s0 }
  0x4d   :  { %240 = vrot.lane.b32.xlu1 %v129_v50, %s2024_s24 }
  0x4e   :  { %238 = vrot.lane.b32.xlu0 %v128_v51, %s2024_s24  ;;  %v95_v51 = vld [vmem:[#allocation2 + $0xcf] sm:$0xff] }
  0x83   :  { %v211_v53 = vpop.permute.xlu1 %210 }
  0x84   :  { %v147_v54 = vpop.permute.xlu0 %146 }
  0x85   :  { %v258_v55 = vsel %vm65_vm0, %v82_v52, %v147_v54  ;;  %v94_v52 = vld [vmem:[#allocation2 + $0xc7] sm:$0xff] }
  0x86   :  { %v275_v56 = vsel %vm274_vm5, %v258_v55, %v211_v53 }
  0x87   :  { %1861 = vmatprep.mubr.msk.f32.mxu0 %vm300_vm6, %v275_v56  ;;  %v213_v58 = vpop.permute.xlu1 %212 }
  0x88   :  { %v149_v59 = vpop.permute.xlu0 %148 }
  0x89   :  { %v259_v60 = vsel %vm65_vm0, %v83_v57, %v149_v59 }
  0x8a   :  { %v276_v61 = vsel %vm274_vm5, %v259_v60, %v213_v58 }
  0x8b   :  { %1862 = vmatmul.mubr.msk.f32.vlgmr.msra.gmra.mrb[0].mxu0 %vm300_vm6, %v276_v61  ;;  %v153_v62 = vpop.permute.xlu1 %152  ;;  %v97_v61 = vld [vmem:[#allocation2 + $0xef] sm:$0xff] }
  0x8c   :  { %v151_v63 = vpop.permute.xlu0 %150  ;;  %v261_v3 = vsel %vm65_vm0, %v85_v0, %v153_v62  ;;  %v96_v62 = vld [vmem:[#allocation2 + $0xe7] sm:$0xff] }
  0x8d   :  { %v260_v4 = vsel %vm65_vm0, %v84_v1, %v151_v63 }
  0x8f   :  { %v217_v5 = vpop.permute.xlu1 %216 }
  0x90   :  { %v215_v6 = vpop.permute.xlu0 %214  ;;  %v278_v7 = vsel %vm274_vm5, %v261_v3, %v217_v5 }
  0x91   :  { %v277_v8 = vsel %vm274_vm5, %v260_v4, %v215_v6  ;;  %v2303_v6 = vld [vmem:[%s2749_s2] ss:$0 sm:$0xff] }
  0x92   :  { %1864 = vmatprep.mubr.msk.f32.mxu0 %vm300_vm6, %v277_v8  ;;  %v757_v8 = vld [vmem:[%s2750_s3 + $0x8] sm:$0xff] }
  0x93   :  { %1865 = vmatmul.mubr.msk.f32.gmra.mrb[2].mxu0 %vm300_vm6, %v278_v7  ;;  %v157_v9 = vpop.permute.xlu1 %156  ;;  %v756_v7 = vld [vmem:[%s2750_s3] sm:$0xff] }
  0x94   :  { %v155_v10 = vpop.permute.xlu0 %154  ;;  %v263_v13 = vsel %vm65_vm0, %v87_v11, %v157_v9 }
  0x95   :  { %v262_v14 = vsel %vm65_vm0, %v86_v12, %v155_v10  ;;  %v1932_v10 = vpack.c.bf16 %v757_v8, %v756_v7 }
  0x97   :  { %v221_v15 = vpop.permute.xlu1 %220  ;;  %1933 = vmatprep.subr.bf16.mxu1 %v1932_v10 }
  0x98   :  { %v219_v16 = vpop.permute.xlu0 %218  ;;  %v280_v17 = vsel %vm274_vm5, %v263_v13, %v221_v15  ;;  %1935 = vmatpush3.bf16.msra.mxu1 %v1932_v10 }
  0x99   :  { %v279_v18 = vsel %vm274_vm5, %v262_v14, %v219_v16  ;;  %v758_v16 = vld [vmem:[%s2750_s3 + $0x10] sm:$0xff]  ;;  %s2026_s3 = smov 16  }
  0x9a   :  { %1867 = vmatprep.mubr.msk.f32.mxu0 %vm300_vm6, %v279_v18  ;;  %1889 = vmatprep.subr.mxu1 %v758_v16 }
  0x9b   :  { %1868 = vmatmul.mubr.msk.f32.gmra.mrb[4].mxu0 %vm300_vm6, %v280_v17  ;;  %v161_v19 = vpop.permute.xlu1 %160 }
  0x9c   :  { %v159_v20 = vpop.permute.xlu0 %158  ;;  %v265_v23 = vsel %vm65_vm0, %v89_v21, %v161_v19  ;;  %1890 = vmatpush3.msra.mxu1 %v758_v16 }
  0x9d   :  { %v264_v24 = vsel %vm65_vm0, %v88_v22, %v159_v20 }
  0x9f   :  { %v225_v25 = vpop.permute.xlu1 %224 }
  0xa0   :  { %v223_v26 = vpop.permute.xlu0 %222  ;;  %v282_v27 = vsel %vm274_vm5, %v265_v23, %v225_v25 }
  0xa1   :  { %v281_v28 = vsel %vm274_vm5, %v264_v24, %v223_v26 }
  0xa2   :  { %1870 = vmatprep.mubr.msk.f32.mxu0 %vm300_vm6, %v281_v28 }
  0xa3   :  { %1871 = vmatmul.mubr.msk.f32.gmra.mrb[6].mxu0 %vm300_vm6, %v282_v27  ;;  %v165_v29 = vpop.permute.xlu1 %164 }
  0xa4   :  { %v163_v30 = vpop.permute.xlu0 %162  ;;  %v267_v33 = vsel %vm65_vm0, %v91_v31, %v165_v29 }
  0xa5   :  { %v266_v34 = vsel %vm65_vm0, %v90_v32, %v163_v30 }
  0xa7   :  { %v229_v35 = vpop.permute.xlu1 %228 }
  0xa8   :  { %v227_v36 = vpop.permute.xlu0 %226  ;;  %v284_v37 = vsel %vm274_vm5, %v267_v33, %v229_v35 }
  0xa9   :  { %v283_v38 = vsel %vm274_vm5, %v266_v34, %v227_v36 }
  0xaa   :  { %1873 = vmatprep.mubr.msk.f32.mxu0 %vm300_vm6, %v283_v38 }
  0xab   :  { %1874 = vmatmul.mubr.msk.f32.gmra.mrb[8].mxu0 %vm300_vm6, %v284_v37  ;;  %v169_v39 = vpop.permute.xlu1 %168 }
  0xac   :  { %v167_v40 = vpop.permute.xlu0 %166  ;;  %v269_v43 = vsel %vm65_vm0, %v93_v41, %v169_v39 }
  0xad   :  { %v268_v44 = vsel %vm65_vm0, %v92_v42, %v167_v40 }
  0xaf   :  { %v233_v45 = vpop.permute.xlu1 %232 }
  0xb0   :  { %v231_v46 = vpop.permute.xlu0 %230  ;;  %v286_v47 = vsel %vm274_vm5, %v269_v43, %v233_v45 }
  0xb1   :  { %v285_v48 = vsel %vm274_vm5, %v268_v44, %v231_v46 }
  0xb2   :  { %1876 = vmatprep.mubr.msk.f32.mxu0 %vm300_vm6, %v285_v48 }
  0xb3   :  { %1877 = vmatmul.mubr.msk.f32.gmra.mrb[10].mxu0 %vm300_vm6, %v286_v47  ;;  %v173_v49 = vpop.permute.xlu1 %172 }
  0xb4   :  { %v171_v50 = vpop.permute.xlu0 %170  ;;  %v271_v53 = vsel %vm65_vm0, %v95_v51, %v173_v49 }
  0xb5   :  { %v270_v54 = vsel %vm65_vm0, %v94_v52, %v171_v50 }
  0xb7   :  { %v237_v55 = vpop.permute.xlu1 %236 }
  0xb8   :  { %v235_v56 = vpop.permute.xlu0 %234  ;;  %v288_v57 = vsel %vm274_vm5, %v271_v53, %v237_v55 }
  0xb9   :  { %v287_v58 = vsel %vm274_vm5, %v270_v54, %v235_v56 }
  0xba   :  { %1879 = vmatprep.mubr.msk.f32.mxu0 %vm300_vm6, %v287_v58 }
  0xbb   :  { %1880 = vmatmul.mubr.msk.f32.gmra.mrb[12].mxu0 %vm300_vm6, %v288_v57  ;;  %v177_v59 = vpop.permute.xlu1 %176 }
  0xbc   :  { %v175_v60 = vpop.permute.xlu0 %174  ;;  %v273_v63 = vsel %vm65_vm0, %v97_v61, %v177_v59 }
  0xbd   :  { %v272_v0 = vsel %vm65_vm0, %v96_v62, %v175_v60  ;;  %vm1147_vm0 = vcmask 1047559  }
  0xbf   :  { %v241_v1 = vpop.permute.xlu1 %240 }
  0xc0   :  { %v239_v3 = vpop.permute.xlu0 %238  ;;  %v290_v4 = vsel %vm274_vm5, %v273_v63, %v241_v1 }
  0xc1   :  { %v289_v5 = vsel %vm274_vm5, %v272_v0, %v239_v3 }
  0xc2   :  { %1882 = vmatprep.mubr.msk.f32.mxu0 %vm300_vm6, %v289_v5 }
  0xc3   :  { %1883 = vmatmul.mubr.msk.f32.gmra.mrb[14].mxu0 %vm300_vm6, %v290_v4  ;;  %vm1534_vm6 = vcmask 916480  }
 0x15e   :  { %v1863_v9 = vpop.f32.mrb[0].mxu0 }
 0x15f   :  { %v425_v11 = vadd.f32 %v1863_v9, %v2303_v6  ;;  %v419_v12 = vpop.f32.mrb[1].mxu0 }
 0x160   :  { %v420_v13 = vadd.f32 %v2303_v6, %v419_v12 }
 0x161   :  { %v499_v14 = vmax.f32 %v425_v11, 0.0 }
 0x162   :  { %v498_v15 = vmax.f32 %v420_v13, 0.0 }
 0x163   :  { %532 = vst.msk [vmem:[#allocation3 + $0x10] sm:$0xff] %vm274_vm5, %v499_v14 }
 0x164   :  { %531 = vst.msk [vmem:[#allocation3 + $0x8] sm:$0xff] %vm274_vm5, %v498_v15 }
 0x166   :  { %v1866_v17 = vpop.f32.mrb[2].mxu0 }
 0x167   :  { %v435_v18 = vadd.f32 %v1866_v17, %v2303_v6  ;;  %v429_v19 = vpop.f32.mrb[3].mxu0 }
 0x168   :  { %v430_v20 = vadd.f32 %v2303_v6, %v429_v19 }
 0x169   :  { %v501_v21 = vmax.f32 %v435_v18, 0.0 }
 0x16a   :  { %v500_v22 = vmax.f32 %v430_v20, 0.0  ;;  %v564_v23 = vld [vmem:[#allocation3 + $0x10] sm:$0xff] }
 0x16b   :  { %534 = vst.msk [vmem:[#allocation3 + $0x30] sm:$0xff] %vm274_vm5, %v501_v21  ;;  %613 = vrot.lane.b32.xlu1 %v564_v23, %s2024_s24  ;;  %v563_v24 = vld [vmem:[#allocation3 + $0x8] sm:$0xff]  ;;  %v580_v26 = vld [vmem:[#allocation3 + $0x11] sm:$0xff] }
 0x16c   :  { %533 = vst.msk [vmem:[#allocation3 + $0x28] sm:$0xff] %vm274_vm5, %v500_v22  ;;  %611 = vrot.lane.b32.xlu0 %v563_v24, %s2024_s24  ;;  %v579_v29 = vld [vmem:[#allocation3 + $0x9] sm:$0xff] }
 0x16e   :  { %v1869_v25 = vpop.f32.mrb[4].mxu0 }
 0x16f   :  { %v445_v27 = vadd.f32 %v1869_v25, %v2303_v6  ;;  %677 = vrot.lane.b32.xlu1 %v580_v26, %s2026_s3  ;;  %v439_v28 = vpop.f32.mrb[5].mxu0 }
 0x170   :  { %v440_v30 = vadd.f32 %v2303_v6, %v439_v28  ;;  %675 = vrot.lane.b32.xlu0 %v579_v29, %s2026_s3 }
 0x171   :  { %v503_v31 = vmax.f32 %v445_v27, 0.0 }
 0x172   :  { %v502_v32 = vmax.f32 %v440_v30, 0.0  ;;  %v566_v33 = vld [vmem:[#allocation3 + $0x30] sm:$0xff]  ;;  %v547_v30 = vld [vmem:[#allocation3 + $0x7] sm:$0xff] }
 0x173   :  { %536 = vst.msk [vmem:[#allocation3 + $0x50] sm:$0xff] %vm274_vm5, %v503_v31  ;;  %617 = vrot.lane.b32.xlu1 %v566_v33, %s2024_s24  ;;  %v565_v34 = vld [vmem:[#allocation3 + $0x28] sm:$0xff]  ;;  %v582_v36 = vld [vmem:[#allocation3 + $0x31] sm:$0xff] }
 0x174   :  { %535 = vst.msk [vmem:[#allocation3 + $0x48] sm:$0xff] %vm274_vm5, %v502_v32  ;;  %615 = vrot.lane.b32.xlu0 %v565_v34, %s2024_s24  ;;  %v581_v39 = vld [vmem:[#allocation3 + $0x29] sm:$0xff] }
 0x175   :  { %v548_v32 = vld [vmem:[#allocation3 + $0xf] sm:$0xff] }
 0x176   :  { %v1872_v35 = vpop.f32.mrb[6].mxu0 }
 0x177   :  { %v455_v37 = vadd.f32 %v1872_v35, %v2303_v6  ;;  %681 = vrot.lane.b32.xlu1 %v582_v36, %s2026_s3  ;;  %v449_v38 = vpop.f32.mrb[7].mxu0 }
 0x178   :  { %v450_v40 = vadd.f32 %v2303_v6, %v449_v38  ;;  %679 = vrot.lane.b32.xlu0 %v581_v39, %s2026_s3 }
 0x179   :  { %v505_v41 = vmax.f32 %v455_v37, 0.0 }
 0x17a   :  { %v504_v42 = vmax.f32 %v450_v40, 0.0  ;;  %v568_v43 = vld [vmem:[#allocation3 + $0x50] sm:$0xff]  ;;  %v549_v40 = vld [vmem:[#allocation3 + $0x27] sm:$0xff] }
 0x17b   :  { %538 = vst.msk [vmem:[#allocation3 + $0x70] sm:$0xff] %vm274_vm5, %v505_v41  ;;  %621 = vrot.lane.b32.xlu1 %v568_v43, %s2024_s24  ;;  %v567_v44 = vld [vmem:[#allocation3 + $0x48] sm:$0xff]  ;;  %v584_v46 = vld [vmem:[#allocation3 + $0x51] sm:$0xff] }
 0x17c   :  { %537 = vst.msk [vmem:[#allocation3 + $0x68] sm:$0xff] %vm274_vm5, %v504_v42  ;;  %619 = vrot.lane.b32.xlu0 %v567_v44, %s2024_s24  ;;  %v583_v49 = vld [vmem:[#allocation3 + $0x49] sm:$0xff] }
 0x17d   :  { %v550_v42 = vld [vmem:[#allocation3 + $0x2f] sm:$0xff] }
 0x17e   :  { %v1875_v45 = vpop.f32.mrb[8].mxu0 }
 0x17f   :  { %v465_v47 = vadd.f32 %v1875_v45, %v2303_v6  ;;  %685 = vrot.lane.b32.xlu1 %v584_v46, %s2026_s3  ;;  %v459_v48 = vpop.f32.mrb[9].mxu0 }
 0x180   :  { %v460_v50 = vadd.f32 %v2303_v6, %v459_v48  ;;  %683 = vrot.lane.b32.xlu0 %v583_v49, %s2026_s3 }
 0x181   :  { %v507_v51 = vmax.f32 %v465_v47, 0.0 }
 0x182   :  { %v506_v52 = vmax.f32 %v460_v50, 0.0  ;;  %v570_v53 = vld [vmem:[#allocation3 + $0x70] sm:$0xff]  ;;  %v551_v50 = vld [vmem:[#allocation3 + $0x47] sm:$0xff] }
 0x183   :  { %540 = vst.msk [vmem:[#allocation3 + $0x90] sm:$0xff] %vm274_vm5, %v507_v51  ;;  %625 = vrot.lane.b32.xlu1 %v570_v53, %s2024_s24  ;;  %v569_v54 = vld [vmem:[#allocation3 + $0x68] sm:$0xff]  ;;  %v586_v56 = vld [vmem:[#allocation3 + $0x71] sm:$0xff] }
 0x184   :  { %539 = vst.msk [vmem:[#allocation3 + $0x88] sm:$0xff] %vm274_vm5, %v506_v52  ;;  %623 = vrot.lane.b32.xlu0 %v569_v54, %s2024_s24  ;;  %v585_v59 = vld [vmem:[#allocation3 + $0x69] sm:$0xff] }
 0x185   :  { %v552_v52 = vld [vmem:[#allocation3 + $0x4f] sm:$0xff] }
 0x186   :  { %v1878_v55 = vpop.f32.mrb[10].mxu0 }
 0x187   :  { %v475_v57 = vadd.f32 %v1878_v55, %v2303_v6  ;;  %689 = vrot.lane.b32.xlu1 %v586_v56, %s2026_s3  ;;  %v469_v58 = vpop.f32.mrb[11].mxu0 }
 0x188   :  { %v470_v60 = vadd.f32 %v2303_v6, %v469_v58  ;;  %687 = vrot.lane.b32.xlu0 %v585_v59, %s2026_s3 }
 0x189   :  { %v509_v61 = vmax.f32 %v475_v57, 0.0 }
 0x18a   :  { %v508_v62 = vmax.f32 %v470_v60, 0.0  ;;  %v572_v63 = vld [vmem:[#allocation3 + $0x90] sm:$0xff]  ;;  %v553_v60 = vld [vmem:[#allocation3 + $0x67] sm:$0xff] }
 0x18b   :  { %542 = vst.msk [vmem:[#allocation3 + $0xb0] sm:$0xff] %vm274_vm5, %v509_v61  ;;  %629 = vrot.lane.b32.xlu1 %v572_v63, %s2024_s24  ;;  %v571_v0 = vld [vmem:[#allocation3 + $0x88] sm:$0xff]  ;;  %v588_v3 = vld [vmem:[#allocation3 + $0x91] sm:$0xff] }
 0x18c   :  { %541 = vst.msk [vmem:[#allocation3 + $0xa8] sm:$0xff] %vm274_vm5, %v508_v62  ;;  %627 = vrot.lane.b32.xlu0 %v571_v0, %s2024_s24  ;;  %v587_v7 = vld [vmem:[#allocation3 + $0x89] sm:$0xff] }
 0x18d   :  { %v554_v62 = vld [vmem:[#allocation3 + $0x6f] sm:$0xff] }
 0x18e   :  { %v1881_v1 = vpop.f32.mrb[12].mxu0 }
 0x18f   :  { %v485_v4 = vadd.f32 %v1881_v1, %v2303_v6  ;;  %693 = vrot.lane.b32.xlu1 %v588_v3, %s2026_s3  ;;  %v479_v5 = vpop.f32.mrb[13].mxu0 }
 0x190   :  { %v480_v8 = vadd.f32 %v2303_v6, %v479_v5  ;;  %691 = vrot.lane.b32.xlu0 %v587_v7, %s2026_s3 }
 0x191   :  { %v511_v9 = vmax.f32 %v485_v4, 0.0 }
 0x192   :  { %v510_v10 = vmax.f32 %v480_v8, 0.0  ;;  %v574_v11 = vld [vmem:[#allocation3 + $0xb0] sm:$0xff]  ;;  %v555_v8 = vld [vmem:[#allocation3 + $0x87] sm:$0xff] }
 0x193   :  { %544 = vst.msk [vmem:[#allocation3 + $0xd0] sm:$0xff] %vm274_vm5, %v511_v9  ;;  %633 = vrot.lane.b32.xlu1 %v574_v11, %s2024_s24  ;;  %v573_v12 = vld [vmem:[#allocation3 + $0xa8] sm:$0xff]  ;;  %v590_v14 = vld [vmem:[#allocation3 + $0xb1] sm:$0xff] }
 0x194   :  { %543 = vst.msk [vmem:[#allocation3 + $0xc8] sm:$0xff] %vm274_vm5, %v510_v10  ;;  %631 = vrot.lane.b32.xlu0 %v573_v12, %s2024_s24  ;;  %v589_v17 = vld [vmem:[#allocation3 + $0xa9] sm:$0xff] }
 0x195   :  { %v556_v10 = vld [vmem:[#allocation3 + $0x8f] sm:$0xff] }
 0x196   :  { %v1884_v13 = vpop.f32.mrb[14].mxu0 }
 0x197   :  { %v495_v15 = vadd.f32 %v1884_v13, %v2303_v6  ;;  %697 = vrot.lane.b32.xlu1 %v590_v14, %s2026_s3  ;;  %v489_v16 = vpop.f32.mrb[15].mxu0 }
 0x198   :  { %v490_v18 = vadd.f32 %v2303_v6, %v489_v16  ;;  %695 = vrot.lane.b32.xlu0 %v589_v17, %s2026_s3 }
 0x199   :  { %v513_v19 = vmax.f32 %v495_v15, 0.0 }
 0x19a   :  { %v512_v20 = vmax.f32 %v490_v18, 0.0  ;;  %v576_v21 = vld [vmem:[#allocation3 + $0xd0] sm:$0xff]  ;;  %v557_v18 = vld [vmem:[#allocation3 + $0xa7] sm:$0xff] }
 0x19b   :  { %546 = vst.msk [vmem:[#allocation3 + $0xf0] sm:$0xff] %vm274_vm5, %v513_v19  ;;  %637 = vrot.lane.b32.xlu1 %v576_v21, %s2024_s24  ;;  %v575_v22 = vld [vmem:[#allocation3 + $0xc8] sm:$0xff]  ;;  %v592_v23 = vld [vmem:[#allocation3 + $0xd1] sm:$0xff] }
 0x19c   :  { %545 = vst.msk [vmem:[#allocation3 + $0xe8] sm:$0xff] %vm274_vm5, %v512_v20  ;;  %635 = vrot.lane.b32.xlu0 %v575_v22, %s2024_s24  ;;  %v591_v24 = vld [vmem:[#allocation3 + $0xc9] sm:$0xff] }
 0x19d   :  { %v558_v20 = vld [vmem:[#allocation3 + $0xaf] sm:$0xff] }
 0x19f   :  { %701 = vrot.lane.b32.xlu1 %v592_v23, %s2026_s3 }
 0x1a0   :  { %699 = vrot.lane.b32.xlu0 %v591_v24, %s2026_s3 }
 0x1a2   :  { %v578_v6 = vld [vmem:[#allocation3 + $0xf0] sm:$0xff] }
 0x1a3   :  { %641 = vrot.lane.b32.xlu1 %v578_v6, %s2024_s24  ;;  %v577_v25 = vld [vmem:[#allocation3 + $0xe8] sm:$0xff]  ;;  %v594_v26 = vld [vmem:[#allocation3 + $0xf1] sm:$0xff] }
 0x1a4   :  { %639 = vrot.lane.b32.xlu0 %v577_v25, %s2024_s24  ;;  %v593_v27 = vld [vmem:[#allocation3 + $0xe9] sm:$0xff] }
 0x1a7   :  { %705 = vrot.lane.b32.xlu1 %v594_v26, %s2026_s3 }
 0x1a8   :  { %703 = vrot.lane.b32.xlu0 %v593_v27, %s2026_s3  ;;  %v559_v27 = vld [vmem:[#allocation3 + $0xc7] sm:$0xff] }
 0x1dd   :  { %v614_v28 = vpop.permute.xlu1 %613 }
 0x1de   :  { %v612_v29 = vpop.permute.xlu0 %611  ;;  %v724_v35 = vsel %vm274_vm5, %v548_v32, %v614_v28 }
 0x1df   :  { %v723_v33 = vsel %vm274_vm5, %v547_v30, %v612_v29  ;;  %v560_v29 = vld [vmem:[#allocation3 + $0xcf] sm:$0xff] }
 0x1e1   :  { %v678_v31 = vpop.permute.xlu1 %677 }
 0x1e2   :  { %v676_v34 = vpop.permute.xlu0 %675  ;;  %v741_v37 = vsel %vm739_vm8, %v724_v35, %v678_v31 }
 0x1e3   :  { %v740_v36 = vsel %vm739_vm8, %v723_v33, %v676_v34 }
 0x1e4   :  { %1891 = vmatprep.mubr.msk.f32.mxu1 %vm766_vm9, %v740_v36 }
 0x1e5   :  { %v618_v38 = vpop.permute.xlu1 %617  ;;  %1892 = vmatmul.mubr.msk.f32.vlgmr.msra.gmra.mrb[0].mxu1 %vm766_vm9, %v741_v37  ;;  %v561_v37 = vld [vmem:[#allocation3 + $0xe7] sm:$0xff] }
 0x1e6   :  { %v616_v39 = vpop.permute.xlu0 %615  ;;  %v726_v45 = vsel %vm274_vm5, %v550_v42, %v618_v38 }
 0x1e7   :  { %v725_v43 = vsel %vm274_vm5, %v549_v40, %v616_v39  ;;  %v562_v39 = vld [vmem:[#allocation3 + $0xef] sm:$0xff] }
 0x1e9   :  { %v682_v41 = vpop.permute.xlu1 %681 }
 0x1ea   :  { %v680_v44 = vpop.permute.xlu0 %679  ;;  %v743_v47 = vsel %vm739_vm8, %v726_v45, %v682_v41  ;;  %v1559_v45 = vld [vmem:[%s2751_s5 + $0x80] sm:$0xff] }
 0x1eb   :  { %v742_v46 = vsel %vm739_vm8, %v725_v43, %v680_v44 }
 0x1ec   :  { %1894 = vmatprep.mubr.msk.f32.mxu1 %vm766_vm9, %v742_v46  ;;  %v1560_v46 = vld [vmem:[%s2751_s5 + $0x88] sm:$0xff] }
 0x1ed   :  { %v622_v48 = vpop.permute.xlu1 %621  ;;  %1895 = vmatmul.mubr.msk.f32.gmra.mrb[2].mxu1 %vm766_vm9, %v743_v47  ;;  %v1543_v47 = vld [vmem:[%s2751_s5] sm:$0xff] }
 0x1ee   :  { %v620_v49 = vpop.permute.xlu0 %619  ;;  %v728_v55 = vsel %vm274_vm5, %v552_v52, %v622_v48  ;;  %v1936_v48 = vpack.c.bf16 %v1560_v46, %v1559_v45 }
 0x1ef   :  { %v727_v53 = vsel %vm274_vm5, %v551_v50, %v620_v49  ;;  %v1544_v49 = vld [vmem:[%s2751_s5 + $0x8] sm:$0xff]  ;;  %v1561_v50 = vld [vmem:[%s2751_s5 + $0x90] sm:$0xff] }
 0x1f0   :  { %v1938_v52 = vpack.c.bf16 %v1544_v49, %v1543_v47  ;;  %1937 = vmatprep.subr.bf16.mxu0 %v1936_v48 }
 0x1f1   :  { %v686_v51 = vpop.permute.xlu1 %685 }
 0x1f2   :  { %v684_v54 = vpop.permute.xlu0 %683  ;;  %v745_v57 = vsel %vm739_vm8, %v728_v55, %v686_v51  ;;  %v1562_v51 = vld [vmem:[%s2751_s5 + $0x98] sm:$0xff]  ;;  %1939 = vmatpush3.bf16.msra.mxu0 %v1938_v52 }
 0x1f3   :  { %v744_v56 = vsel %vm739_vm8, %v727_v53, %v684_v54  ;;  %v1940_v53 = vpack.c.bf16 %v1562_v51, %v1561_v50  ;;  %v1545_v54 = vld [vmem:[%s2751_s5 + $0x10] sm:$0xff]  ;;  %v1546_v55 = vld [vmem:[%s2751_s5 + $0x18] sm:$0xff] }
 0x1f4   :  { %1897 = vmatprep.mubr.msk.f32.mxu1 %vm766_vm9, %v744_v56  ;;  %v1563_v56 = vld [vmem:[%s2751_s5 + $0xa0] sm:$0xff] }
 0x1f5   :  { %v626_v58 = vpop.permute.xlu1 %625  ;;  %1898 = vmatmul.mubr.msk.f32.gmra.mrb[4].mxu1 %vm766_vm9, %v745_v57  ;;  %v1564_v57 = vld [vmem:[%s2751_s5 + $0xa8] sm:$0xff]  ;;  %1941 = vmatprep.subr.bf16.mxu0 %v1940_v53 }
 0x1f6   :  { %v624_v59 = vpop.permute.xlu0 %623  ;;  %v730_v1 = vsel %vm274_vm5, %v554_v62, %v626_v58  ;;  %v1942_v58 = vpack.c.bf16 %v1546_v55, %v1545_v54  ;;  %v1565_v62 = vld [vmem:[%s2751_s5 + $0xb0] sm:$0xff] }
 0x1f7   :  { %v729_v63 = vsel %vm274_vm5, %v553_v60, %v624_v59  ;;  %v1944_v59 = vpack.c.bf16 %v1564_v57, %v1563_v56  ;;  %v1547_v60 = vld [vmem:[%s2751_s5 + $0x20] sm:$0xff] }
 0x1f8   :  { %1943 = vmatpush3.bf16.msra.mxu0 %v1942_v58 }
 0x1f9   :  { %v690_v61 = vpop.permute.xlu1 %689  ;;  %1945 = vmatprep.subr.bf16.mxu0 %v1944_v59 }
 0x1fa   :  { %v688_v0 = vpop.permute.xlu0 %687  ;;  %v747_v4 = vsel %vm739_vm8, %v730_v1, %v690_v61  ;;  %v1548_v61 = vld [vmem:[%s2751_s5 + $0x28] sm:$0xff] }
 0x1fb   :  { %v746_v3 = vsel %vm739_vm8, %v729_v63, %v688_v0  ;;  %v1566_v63 = vld [vmem:[%s2751_s5 + $0xb8] sm:$0xff]  ;;  %v1946_v0 = vpack.c.bf16 %v1548_v61, %v1547_v60 }
 0x1fc   :  { %1900 = vmatprep.mubr.msk.f32.mxu1 %vm766_vm9, %v746_v3  ;;  %v1948_v1 = vpack.c.bf16 %v1566_v63, %v1565_v62  ;;  %v1549_v3 = vld [vmem:[%s2751_s5 + $0x30] sm:$0xff] }
 0x1fd   :  { %v630_v5 = vpop.permute.xlu1 %629  ;;  %1901 = vmatmul.mubr.msk.f32.gmra.mrb[6].mxu1 %vm766_vm9, %v747_v4  ;;  %v1550_v4 = vld [vmem:[%s2751_s5 + $0x38] sm:$0xff]  ;;  %1947 = vmatpush3.bf16.msra.mxu0 %v1946_v0 }
 0x1fe   :  { %v628_v7 = vpop.permute.xlu0 %627  ;;  %v732_v13 = vsel %vm274_vm5, %v556_v10, %v630_v5  ;;  %v1567_v5 = vld [vmem:[%s2751_s5 + $0xc0] sm:$0xff]  ;;  %1949 = vmatprep.subr.bf16.mxu0 %v1948_v1 }
 0x1ff   :  { %v731_v11 = vsel %vm274_vm5, %v555_v8, %v628_v7  ;;  %v1568_v7 = vld [vmem:[%s2751_s5 + $0xc8] sm:$0xff]  ;;  %v1950_v8 = vpack.c.bf16 %v1550_v4, %v1549_v3  ;;  %v2483_v10 = vld [vmem:[%s2752_s4] ss:$0 sm:$0xff]  ;;  %s2027_s4 = smov 32  }
 0x201   :  { %v694_v9 = vpop.permute.xlu1 %693  ;;  %1951 = vmatpush3.bf16.msra.mxu0 %v1950_v8 }
 0x202   :  { %v692_v12 = vpop.permute.xlu0 %691  ;;  %v749_v15 = vsel %vm739_vm8, %v732_v13, %v694_v9  ;;  %v1952_v9 = vpack.c.bf16 %v1568_v7, %v1567_v5 }
 0x203   :  { %v748_v14 = vsel %vm739_vm8, %v731_v11, %v692_v12 }
 0x204   :  { %1903 = vmatprep.mubr.msk.f32.mxu1 %vm766_vm9, %v748_v14  ;;  %1953 = vmatprep.subr.bf16.mxu0 %v1952_v9 }
 0x205   :  { %v634_v16 = vpop.permute.xlu1 %633  ;;  %1904 = vmatmul.mubr.msk.f32.gmra.mrb[8].mxu1 %vm766_vm9, %v749_v15 }
 0x206   :  { %v632_v17 = vpop.permute.xlu0 %631  ;;  %v734_v23 = vsel %vm274_vm5, %v558_v20, %v634_v16 }
 0x207   :  { %v733_v21 = vsel %vm274_vm5, %v557_v18, %v632_v17 }
 0x209   :  { %v698_v19 = vpop.permute.xlu1 %697 }
 0x20a   :  { %v696_v22 = vpop.permute.xlu0 %695  ;;  %v751_v6 = vsel %vm739_vm8, %v734_v23, %v698_v19 }
 0x20b   :  { %v750_v24 = vsel %vm739_vm8, %v733_v21, %v696_v22 }
 0x20c   :  { %1906 = vmatprep.mubr.msk.f32.mxu1 %vm766_vm9, %v750_v24 }
 0x20d   :  { %v638_v25 = vpop.permute.xlu1 %637  ;;  %1907 = vmatmul.mubr.msk.f32.gmra.mrb[10].mxu1 %vm766_vm9, %v751_v6 }
 0x20e   :  { %v636_v26 = vpop.permute.xlu0 %635  ;;  %v736_v32 = vsel %vm274_vm5, %v560_v29, %v638_v25 }
 0x20f   :  { %v735_v30 = vsel %vm274_vm5, %v559_v27, %v636_v26 }
 0x211   :  { %v702_v28 = vpop.permute.xlu1 %701 }
 0x212   :  { %v700_v31 = vpop.permute.xlu0 %699  ;;  %v753_v34 = vsel %vm739_vm8, %v736_v32, %v702_v28 }
 0x213   :  { %v752_v33 = vsel %vm739_vm8, %v735_v30, %v700_v31 }
 0x214   :  { %1909 = vmatprep.mubr.msk.f32.mxu1 %vm766_vm9, %v752_v33 }
 0x215   :  { %v642_v35 = vpop.permute.xlu1 %641  ;;  %1910 = vmatmul.mubr.msk.f32.gmra.mrb[12].mxu1 %vm766_vm9, %v753_v34 }
 0x216   :  { %v640_v36 = vpop.permute.xlu0 %639  ;;  %v738_v42 = vsel %vm274_vm5, %v562_v39, %v642_v35 }
 0x217   :  { %v737_v40 = vsel %vm274_vm5, %v561_v37, %v640_v36  ;;  %vm1532_vm5 = vcmask 785408  }
 0x219   :  { %v706_v38 = vpop.permute.xlu1 %705 }
 0x21a   :  { %v704_v41 = vpop.permute.xlu0 %703  ;;  %v755_v44 = vsel %vm739_vm8, %v738_v42, %v706_v38 }
 0x21b   :  { %v754_v43 = vsel %vm739_vm8, %v737_v40, %v704_v41 }
 0x21c   :  { %1912 = vmatprep.mubr.msk.f32.mxu1 %vm766_vm9, %v754_v43 }
 0x21d   :  { %1913 = vmatmul.mubr.msk.f32.gmra.mrb[14].mxu1 %vm766_vm9, %v755_v44 }
 0x21e   :  { %1923 = vmatprep.mubr.msk.f32.mxu1 %vm2034_vm7, %v2022_v2 }
 0x2b8   :  { %v1893_v11 = vpop.f32.mrb[0].mxu1 }
 0x2b9   :  { %v887_v12 = vadd.f32 %v1893_v11, %v2483_v10  ;;  %v881_v13 = vpop.f32.mrb[1].mxu1 }
 0x2ba   :  { %v882_v14 = vadd.f32 %v2483_v10, %v881_v13 }
 0x2bb   :  { %v961_v15 = vmax.f32 %v887_v12, 0.0 }
 0x2bc   :  { %v960_v16 = vmax.f32 %v882_v14, 0.0 }
 0x2bd   :  { %977 = vst.msk [vmem:[#allocation4 + $0x8] sm:$0xff] %vm739_vm8, %v961_v15 }
 0x2be   :  { %976 = vst.msk [vmem:[#allocation4] sm:$0xff] %vm739_vm8, %v960_v16 }
 0x2c0   :  { %v1896_v17 = vpop.f32.mrb[2].mxu1 }
 0x2c1   :  { %v897_v18 = vadd.f32 %v1896_v17, %v2483_v10  ;;  %v891_v19 = vpop.f32.mrb[3].mxu1 }
 0x2c2   :  { %v892_v20 = vadd.f32 %v2483_v10, %v891_v19 }
 0x2c3   :  { %v963_v21 = vmax.f32 %v897_v18, 0.0 }
 0x2c4   :  { %v962_v22 = vmax.f32 %v892_v20, 0.0  ;;  %v1072_v46 = vld [vmem:[#allocation4 + $0xa] sm:$0x1]  ;;  %v1064_v58 = vld [vmem:[#allocation4 + $0x9] sm:$0x1] }
 0x2c5   :  { %979 = vst.msk [vmem:[#allocation4 + $0x18] sm:$0xff] %vm739_vm8, %v963_v21  ;;  %v1008_v55 = vld [vmem:[#allocation4 + $0x2] sm:$0x1]  ;;  %v1000_v57 = vld [vmem:[#allocation4 + $0x1] sm:$0x1] }
 0x2c6   :  { %978 = vst.msk [vmem:[#allocation4 + $0x10] sm:$0xff] %vm739_vm8, %v962_v22  ;;  %v1024_v60 = vld [vmem:[#allocation4 + $0x4] sm:$0x1]  ;;  %v1088_v0 = vld [vmem:[#allocation4 + $0xc] sm:$0x1] }
 0x2c7   :  { %v1016_v1 = vld [vmem:[#allocation4 + $0x3] sm:$0x1]  ;;  %v1080_v3 = vld [vmem:[#allocation4 + $0xb] sm:$0x1]  ;;  %v1040_v12 = vld [vmem:[#allocation4 + $0x6] sm:$0x1] }
 0x2c8   :  { %v1899_v23 = vpop.f32.mrb[4].mxu1  ;;  %v1104_v13 = vld [vmem:[#allocation4 + $0xe] sm:$0x1] }
 0x2c9   :  { %v907_v24 = vadd.f32 %v1899_v23, %v2483_v10  ;;  %v901_v6 = vpop.f32.mrb[5].mxu1 }
 0x2ca   :  { %v902_v25 = vadd.f32 %v2483_v10, %v901_v6 }
 0x2cb   :  { %v965_v26 = vmax.f32 %v907_v24, 0.0 }
 0x2cc   :  { %v964_v27 = vmax.f32 %v902_v25, 0.0  ;;  %v1073_v29 = vld [vmem:[#allocation4 + $0x1a] sm:$0x1]  ;;  %v1065_v30 = vld [vmem:[#allocation4 + $0x19] sm:$0x1] }
 0x2cd   :  { %981 = vst.msk [vmem:[#allocation4 + $0x28] sm:$0xff] %vm739_vm8, %v965_v26  ;;  %v1009_v28 = vld [vmem:[#allocation4 + $0x12] sm:$0x1]  ;;  %v1001_v31 = vld [vmem:[#allocation4 + $0x11] sm:$0x1]  ;;  %v1381_v36 = vrot.slane %v1073_v29, 7 }
 0x2ce   :  { %980 = vst.msk [vmem:[#allocation4 + $0x20] sm:$0xff] %vm739_vm8, %v964_v27  ;;  %v1025_v32 = vld [vmem:[#allocation4 + $0x14] sm:$0x1]  ;;  %v1089_v33 = vld [vmem:[#allocation4 + $0x1c] sm:$0x1]  ;;  %v1183_v35 = vrot.slane %v1009_v28, 7 }
 0x2cf   :  { %v1356_v37 = vrot.slane %v1065_v30, 7  ;;  %v1017_v38 = vld [vmem:[#allocation4 + $0x13] sm:$0x1]  ;;  %v1158_v41 = vrot.slane %v1001_v31, 7  ;;  %v1233_v42 = vrot.slane %v1025_v32, 7  ;;  %v1431_v43 = vrot.slane %v1089_v33, 7 }
 0x2d0   :  { %v1902_v34 = vpop.f32.mrb[6].mxu1  ;;  %v1081_v44 = vld [vmem:[#allocation4 + $0x1b] sm:$0x1]  ;;  %v1041_v47 = vld [vmem:[#allocation4 + $0x16] sm:$0x1]  ;;  %v1208_v51 = vrot.slane %v1017_v38, 7  ;;  %v1382_v63 = vsel %vm1129_vm10, %v1381_v36, %v1072_v46  ;;  %v1184_v16 = vsel %vm1129_vm10, %v1183_v35, %v1008_v55 }
 0x2d1   :  { %v917_v39 = vadd.f32 %v1902_v34, %v2483_v10  ;;  %v911_v40 = vpop.f32.mrb[7].mxu1  ;;  %v1105_v48 = vld [vmem:[#allocation4 + $0x1e] sm:$0x1]  ;;  %v2499_v49 = vld [vmem:[#allocation4 + $0x15] sm:$0x1]  ;;  %v1406_v61 = vrot.slane %v1081_v44, 7  ;;  %v1159_v17 = vsel %vm1129_vm10, %v1158_v41, %v1000_v57  ;;  %v1357_v18 = vsel %vm1129_vm10, %v1356_v37, %v1064_v58 }
 0x2d2   :  { %v912_v45 = vadd.f32 %v2483_v10, %v911_v40  ;;  %v2501_v52 = vld [vmem:[#allocation4 + $0x1d] sm:$0x1]  ;;  %v2503_v53 = vld [vmem:[#allocation4 + $0x17] sm:$0x1]  ;;  %v1283_v4 = vrot.slane %v1041_v47, 7  ;;  %v1481_v5 = vrot.slane %v1105_v48, 7  ;;  %v1234_v21 = vsel %vm1129_vm10, %v1233_v42, %v1024_v60 }
 0x2d3   :  { %v967_v50 = vmax.f32 %v917_v39, 0.0  ;;  %v1258_v7 = vrot.slane %v2499_v49, 7  ;;  %v1456_v14 = vrot.slane %v2501_v52, 7  ;;  %v1308_v15 = vrot.slane %v2503_v53, 7  ;;  %v1032_v35 = vld [vmem:[#allocation4 + $0x5] sm:$0x1] }
 0x2d4   :  { %v966_v54 = vmax.f32 %v912_v45, 0.0  ;;  %v2505_v56 = vld [vmem:[#allocation4 + $0x2a] sm:$0x1]  ;;  %v2507_v59 = vld [vmem:[#allocation4 + $0x29] sm:$0x1]  ;;  %v1432_v6 = vsel %vm1129_vm10, %v1431_v43, %v1088_v0  ;;  %v1209_v26 = vsel %vm1129_vm10, %v1208_v51, %v1016_v1  ;;  %v1407_v27 = vsel %vm1129_vm10, %v1406_v61, %v1080_v3 }
 0x2d5   :  { %983 = vst.msk [vmem:[#allocation4 + $0x38] sm:$0xff] %vm739_vm8, %v967_v50  ;;  %v2510_v62 = vld [vmem:[#allocation4 + $0x22] sm:$0x1]  ;;  %v1383_v8 = vrot.slane %v2505_v56, 6  ;;  %v1002_v9 = vld [vmem:[#allocation4 + $0x21] sm:$0x1]  ;;  %v1284_v33 = vsel %vm1129_vm10, %v1283_v4, %v1040_v12  ;;  %v1482_v34 = vsel %vm1129_vm10, %v1481_v5, %v1104_v13  ;;  %v1259_v50 = vsel %vm1129_vm10, %v1258_v7, %v1032_v35 }
 0x2d6   :  { %982 = vst.msk [vmem:[#allocation4 + $0x30] sm:$0xff] %vm739_vm8, %v966_v54  ;;  %v1358_v11 = vrot.slane %v2507_v59, 6  ;;  %v1026_v19 = vld [vmem:[#allocation4 + $0x24] sm:$0x1]  ;;  %v1090_v20 = vld [vmem:[#allocation4 + $0x2c] sm:$0x1] }
 0x2d7   :  { %v1018_v22 = vld [vmem:[#allocation4 + $0x23] sm:$0x1]  ;;  %v1185_v24 = vrot.slane %v2510_v62, 6  ;;  %v1082_v25 = vld [vmem:[#allocation4 + $0x2b] sm:$0x1]  ;;  %v1160_v31 = vrot.slane %v1002_v9, 6  ;;  %v1384_v54 = vsel %vm1132_vm11, %v1383_v8, %v1382_v63 }
 0x2d8   :  { %v1905_v23 = vpop.f32.mrb[8].mxu1  ;;  %v1042_v28 = vld [vmem:[#allocation4 + $0x26] sm:$0x1]  ;;  %v1106_v32 = vld [vmem:[#allocation4 + $0x2e] sm:$0x1]  ;;  %v1235_v39 = vrot.slane %v1026_v19, 6  ;;  %v1359_v56 = vsel %vm1132_vm11, %v1358_v11, %v1357_v18 }
 0x2d9   :  { %v927_v29 = vadd.f32 %v1905_v23, %v2483_v10  ;;  %v921_v30 = vpop.f32.mrb[9].mxu1  ;;  %v1034_v36 = vld [vmem:[#allocation4 + $0x25] sm:$0x1]  ;;  %v1096_v37 = vld [vmem:[#allocation4 + $0xd] sm:$0x1]  ;;  %v1433_v40 = vrot.slane %v1090_v20, 6  ;;  %v1186_v60 = vsel %vm1132_vm11, %v1185_v24, %v1184_v16  ;;  %v1161_v62 = vsel %vm1132_vm11, %v1160_v31, %v1159_v17 }
 0x2da   :  { %v922_v38 = vadd.f32 %v2483_v10, %v921_v30  ;;  %v1210_v41 = vrot.slane %v1018_v22, 6  ;;  %v1098_v42 = vld [vmem:[#allocation4 + $0x2d] sm:$0x1]  ;;  %v1408_v44 = vrot.slane %v1082_v25, 6  ;;  %v1285_v45 = vrot.slane %v1042_v28, 6 }
 0x2db   :  { %v969_v43 = vmax.f32 %v927_v29, 0.0  ;;  %v1483_v46 = vrot.slane %v1106_v32, 6  ;;  %v1048_v47 = vld [vmem:[#allocation4 + $0x7] sm:$0x1]  ;;  %v1260_v51 = vrot.slane %v1034_v36, 6  ;;  %v1457_v52 = vsel %vm1129_vm10, %v1456_v14, %v1096_v37 }
 0x2dc   :  { %v968_v48 = vmax.f32 %v922_v38, 0.0  ;;  %v1075_v49 = vld [vmem:[#allocation4 + $0x3a] sm:$0x1]  ;;  %v1050_v53 = vld [vmem:[#allocation4 + $0x27] sm:$0x1]  ;;  %v1458_v57 = vrot.slane %v1098_v42, 6  ;;  %v1309_v58 = vsel %vm1129_vm10, %v1308_v15, %v1048_v47  ;;  %v1236_v1 = vsel %vm1132_vm11, %v1235_v39, %v1234_v21 }
 0x2dd   :  { %985 = vst.msk [vmem:[#allocation4 + $0x48] sm:$0xff] %vm739_vm8, %v969_v43  ;;  %v1067_v55 = vld [vmem:[#allocation4 + $0x39] sm:$0x1]  ;;  %v1011_v59 = vld [vmem:[#allocation4 + $0x32] sm:$0x1]  ;;  %v1434_v3 = vsel %vm1132_vm11, %v1433_v40, %v1432_v6  ;;  %v1385_v63 = vrot.slane %v1075_v49, 5  ;;  %v1211_v7 = vsel %vm1132_vm11, %v1210_v41, %v1209_v26  ;;  %v1409_v8 = vsel %vm1132_vm11, %v1408_v44, %v1407_v27 }
 0x2de   :  { %984 = vst.msk [vmem:[#allocation4 + $0x40] sm:$0xff] %vm739_vm8, %v968_v48  ;;  %v1003_v61 = vld [vmem:[#allocation4 + $0x31] sm:$0x1]  ;;  %v1027_v0 = vld [vmem:[#allocation4 + $0x34] sm:$0x1]  ;;  %v1310_v9 = vrot.slane %v1050_v53, 6  ;;  %v1286_v15 = vsel %vm1132_vm11, %v1285_v45, %v1284_v33  ;;  %v1484_v16 = vsel %vm1132_vm11, %v1483_v46, %v1482_v34  ;;  %v1261_v17 = vsel %vm1132_vm11, %v1260_v51, %v1259_v50 }
 0x2df   :  { %v1091_v4 = vld [vmem:[#allocation4 + $0x3c] sm:$0x1]  ;;  %v1019_v5 = vld [vmem:[#allocation4 + $0x33] sm:$0x1]  ;;  %v1360_v12 = vrot.slane %v1067_v55, 5  ;;  %v1187_v20 = vrot.slane %v1011_v59, 5  ;;  %v1459_v28 = vsel %vm1132_vm11, %v1458_v57, %v1457_v52  ;;  %v1386_v36 = vsel %vm1135_vm12, %v1385_v63, %v1384_v54 }
 0x2e0   :  { %v1908_v11 = vpop.f32.mrb[10].mxu1  ;;  %v1083_v13 = vld [vmem:[#allocation4 + $0x3b] sm:$0x1]  ;;  %v1043_v14 = vld [vmem:[#allocation4 + $0x36] sm:$0x1]  ;;  %v1162_v21 = vrot.slane %v1003_v61, 5  ;;  %v1311_v33 = vsel %vm1132_vm11, %v1310_v9, %v1309_v58 }
 0x2e1   :  { %v937_v18 = vadd.f32 %v1908_v11, %v2483_v10  ;;  %v931_v19 = vpop.f32.mrb[11].mxu1  ;;  %v1237_v22 = vrot.slane %v1027_v0, 5  ;;  %v1107_v23 = vld [vmem:[#allocation4 + $0x3e] sm:$0x1]  ;;  %v1435_v6 = vrot.slane %v1091_v4, 5  ;;  %v1212_v25 = vrot.slane %v1019_v5, 5 }
 0x2e2   :  { %v932_v24 = vadd.f32 %v2483_v10, %v931_v19  ;;  %v1035_v26 = vld [vmem:[#allocation4 + $0x35] sm:$0x1]  ;;  %v1099_v27 = vld [vmem:[#allocation4 + $0x3d] sm:$0x1]  ;;  %v1410_v30 = vrot.slane %v1083_v13, 5  ;;  %v1287_v31 = vrot.slane %v1043_v14, 5  ;;  %v1361_v38 = vsel %vm1135_vm12, %v1360_v12, %v1359_v56 }
 0x2e3   :  { %v971_v29 = vmax.f32 %v937_v18, 0.0  ;;  %v1051_v32 = vld [vmem:[#allocation4 + $0x37] sm:$0x1]  ;;  %v1485_v39 = vrot.slane %v1107_v23, 5  ;;  %v1188_v41 = vsel %vm1135_vm12, %v1187_v20, %v1186_v60  ;;  %v1163_v43 = vsel %vm1135_vm12, %v1162_v21, %v1161_v62 }
 0x2e4   :  { %v970_v34 = vmax.f32 %v932_v24, 0.0  ;;  %v1076_v35 = vld [vmem:[#allocation4 + $0x4a] sm:$0x1]  ;;  %v1068_v37 = vld [vmem:[#allocation4 + $0x49] sm:$0x1]  ;;  %v1262_v44 = vrot.slane %v1035_v26, 5  ;;  %v1238_v48 = vsel %vm1135_vm12, %v1237_v22, %v1236_v1  ;;  %v1436_v49 = vsel %vm1135_vm12, %v1435_v6, %v1434_v3 }
 0x2e5   :  { %987 = vst.msk [vmem:[#allocation4 + $0x58] sm:$0xff] %vm739_vm8, %v971_v29  ;;  %v1012_v40 = vld [vmem:[#allocation4 + $0x42] sm:$0x1]  ;;  %v1004_v42 = vld [vmem:[#allocation4 + $0x41] sm:$0x1]  ;;  %v1460_v45 = vrot.slane %v1099_v27, 5  ;;  %v1213_v50 = vsel %vm1135_vm12, %v1212_v25, %v1211_v7  ;;  %v1411_v56 = vsel %vm1135_vm12, %v1410_v30, %v1409_v8  ;;  %v1288_v57 = vsel %vm1135_vm12, %v1287_v31, %v1286_v15 }
 0x2e6   :  { %986 = vst.msk [vmem:[#allocation4 + $0x50] sm:$0xff] %vm739_vm8, %v970_v34  ;;  %v1028_v46 = vld [vmem:[#allocation4 + $0x44] sm:$0x1]  ;;  %v1092_v47 = vld [vmem:[#allocation4 + $0x4c] sm:$0x1]  ;;  %v1312_v51 = vrot.slane %v1051_v32, 5  ;;  %v1486_v0 = vsel %vm1135_vm12, %v1485_v39, %v1484_v16  ;;  %v1263_v7 = vsel %vm1135_vm12, %v1262_v44, %v1261_v17 }
 0x2e7   :  { %v1387_v52 = vrot.slane %v1076_v35, 4  ;;  %v1362_v53 = vrot.slane %v1068_v37, 4  ;;  %v1020_v54 = vld [vmem:[#allocation4 + $0x43] sm:$0x1]  ;;  %v1084_v55 = vld [vmem:[#allocation4 + $0x4b] sm:$0x1]  ;;  %v1461_v9 = vsel %vm1135_vm12, %v1460_v45, %v1459_v28 }
 0x2e8   :  { %v1911_v58 = vpop.f32.mrb[12].mxu1  ;;  %v1189_v59 = vrot.slane %v1012_v40, 4  ;;  %v1164_v60 = vrot.slane %v1004_v42, 4  ;;  %v1239_v61 = vrot.slane %v1028_v46, 4  ;;  %v1044_v62 = vld [vmem:[#allocation4 + $0x46] sm:$0x1]  ;;  %v1313_v15 = vsel %vm1135_vm12, %v1312_v51, %v1311_v33 }
 0x2e9   :  { %v947_v1 = vadd.f32 %v1911_v58, %v2483_v10  ;;  %v941_v3 = vpop.f32.mrb[13].mxu1  ;;  %v1437_v63 = vrot.slane %v1092_v47, 4  ;;  %v1108_v4 = vld [vmem:[#allocation4 + $0x4e] sm:$0x1]  ;;  %v1036_v5 = vld [vmem:[#allocation4 + $0x45] sm:$0x1]  ;;  %v1388_v16 = vsel %vm1138_vm13, %v1387_v52, %v1386_v36  ;;  %v1363_v24 = vsel %vm1138_vm13, %v1362_v53, %v1361_v38 }
 0x2ea   :  { %v942_v8 = vadd.f32 %v2483_v10, %v941_v3  ;;  %v1214_v11 = vrot.slane %v1020_v54, 4  ;;  %v1412_v12 = vrot.slane %v1084_v55, 4  ;;  %v1100_v13 = vld [vmem:[#allocation4 + $0x4d] sm:$0x1]  ;;  %v1052_v14 = vld [vmem:[#allocation4 + $0x47] sm:$0x1]  ;;  %v1190_v23 = vsel %vm1138_vm13, %v1189_v59, %v1188_v41 }
 0x2eb   :  { %v973_v18 = vmax.f32 %v947_v1, 0.0  ;;  %v1289_v19 = vrot.slane %v1044_v62, 4  ;;  %v1487_v20 = vrot.slane %v1108_v4, 4  ;;  %v1264_v6 = vrot.slane %v1036_v5, 4 }
 0x2ec   :  { %v972_v21 = vmax.f32 %v942_v8, 0.0  ;;  %v1077_v22 = vld [vmem:[#allocation4 + $0x5a] sm:$0x1]  ;;  %v1069_v17 = vld [vmem:[#allocation4 + $0x59] sm:$0x1]  ;;  %v1165_v27 = vsel %vm1138_vm13, %v1164_v60, %v1163_v43  ;;  %v1240_v28 = vsel %vm1138_vm13, %v1239_v61, %v1238_v48  ;;  %v1462_v29 = vrot.slane %v1100_v13, 4 }
 0x2ed   :  { %989 = vst.msk [vmem:[#allocation4 + $0x68] sm:$0xff] %vm739_vm8, %v973_v18  ;;  %v1013_v25 = vld [vmem:[#allocation4 + $0x52] sm:$0x1]  ;;  %v1005_v26 = vld [vmem:[#allocation4 + $0x51] sm:$0x1]  ;;  %v1314_v30 = vrot.slane %v1052_v14, 4  ;;  %v1438_v34 = vsel %vm1138_vm13, %v1437_v63, %v1436_v49  ;;  %v1215_v35 = vsel %vm1138_vm13, %v1214_v11, %v1213_v50  ;;  %v1413_v36 = vsel %vm1138_vm13, %v1412_v12, %v1411_v56 }
 0x2ee   :  { %988 = vst.msk [vmem:[#allocation4 + $0x60] sm:$0xff] %vm739_vm8, %v972_v21  ;;  %v1389_v31 = vrot.slane %v1077_v22, 3  ;;  %v1029_v32 = vld [vmem:[#allocation4 + $0x54] sm:$0x1]  ;;  %v1093_v33 = vld [vmem:[#allocation4 + $0x5c] sm:$0x1]  ;;  %v1290_v41 = vsel %vm1138_vm13, %v1289_v19, %v1288_v57  ;;  %v1488_v42 = vsel %vm1138_vm13, %v1487_v20, %v1486_v0  ;;  %v1265_v48 = vsel %vm1138_vm13, %v1264_v6, %v1263_v7 }
 0x2ef   :  { %v1191_v37 = vrot.slane %v1013_v25, 3  ;;  %v1364_v38 = vrot.slane %v1069_v17, 3  ;;  %v1021_v39 = vld [vmem:[#allocation4 + $0x53] sm:$0x1]  ;;  %v1085_v40 = vld [vmem:[#allocation4 + $0x5b] sm:$0x1]  ;;  %v1463_v54 = vsel %vm1138_vm13, %v1462_v29, %v1461_v9  ;;  %v1315_v55 = vsel %vm1138_vm13, %v1314_v30, %v1313_v15 }
 0x2f0   :  { %v1914_v43 = vpop.f32.mrb[14].mxu1  ;;  %v1166_v44 = vrot.slane %v1005_v26, 3  ;;  %v1241_v45 = vrot.slane %v1029_v32, 3  ;;  %v1439_v46 = vrot.slane %v1093_v33, 3  ;;  %v1045_v47 = vld [vmem:[#allocation4 + $0x56] sm:$0x1]  ;;  %v1390_v57 = vsel %vm1141_vm14, %v1389_v31, %v1388_v16 }
 0x2f1   :  { %v957_v49 = vadd.f32 %v1914_v43, %v2483_v10  ;;  %v951_v50 = vpop.f32.mrb[15].mxu1  ;;  %v1216_v51 = vrot.slane %v1021_v39, 3  ;;  %v1109_v52 = vld [vmem:[#allocation4 + $0x5e] sm:$0x1]  ;;  %v1037_v53 = vld [vmem:[#allocation4 + $0x55] sm:$0x1]  ;;  %v1192_v5 = vsel %vm1141_vm14, %v1191_v37, %v1190_v23  ;;  %v1365_v9 = vsel %vm1141_vm14, %v1364_v38, %v1363_v24 }
 0x2f2   :  { %v952_v56 = vadd.f32 %v2483_v10, %v951_v50  ;;  %v1414_v58 = vrot.slane %v1085_v40, 3  ;;  %v1291_v59 = vrot.slane %v1045_v47, 3  ;;  %v1101_v60 = vld [vmem:[#allocation4 + $0x5d] sm:$0x1]  ;;  %v1053_v61 = vld [vmem:[#allocation4 + $0x57] sm:$0x1]  ;;  %v1167_v13 = vsel %vm1141_vm14, %v1166_v44, %v1165_v27 }
 0x2f3   :  { %v975_v62 = vmax.f32 %v957_v49, 0.0  ;;  %v1489_v0 = vrot.slane %v1109_v52, 3  ;;  %v1266_v1 = vrot.slane %v1037_v53, 3  ;;  %v1464_v3 = vrot.slane %v1101_v60, 3  ;;  %v2594_v23 = vld [vmem:[#allocation4 + $0x1f] sm:$0x1] }
 0x2f4   :  { %v974_v63 = vmax.f32 %v952_v56, 0.0  ;;  %v1078_v4 = vld [vmem:[#allocation4 + $0x6a] sm:$0x1]  ;;  %v1070_v7 = vld [vmem:[#allocation4 + $0x69] sm:$0x1]  ;;  %v1316_v8 = vrot.slane %v1053_v61, 3  ;;  %v1242_v15 = vsel %vm1141_vm14, %v1241_v45, %v1240_v28  ;;  %v1440_v21 = vsel %vm1141_vm14, %v1439_v46, %v1438_v34 }
 0x2f5   :  { %991 = vst.msk [vmem:[#allocation4 + $0x78] sm:$0xff] %vm739_vm8, %v975_v62  ;;  %v1014_v10 = vld [vmem:[#allocation4 + $0x62] sm:$0x1]  ;;  %v1391_v11 = vrot.slane %v1078_v4, 2  ;;  %v1006_v12 = vld [vmem:[#allocation4 + $0x61] sm:$0x1]  ;;  %v1217_v22 = vsel %vm1141_vm14, %v1216_v51, %v1215_v35  ;;  %v1415_v26 = vsel %vm1141_vm14, %v1414_v58, %v1413_v36  ;;  %v1292_v27 = vsel %vm1141_vm14, %v1291_v59, %v1290_v41 }
 0x2f6   :  { %v1366_v14 = vrot.slane %v1070_v7, 2  ;;  %990 = vst.msk [vmem:[#allocation4 + $0x70] sm:$0xff] %vm739_vm8, %v974_v63  ;;  %v1193_v18 = vrot.slane %v1014_v10, 2  ;;  %v1168_v16 = vrot.slane %v1006_v12, 2  ;;  %v1030_v19 = vld [vmem:[#allocation4 + $0x64] sm:$0x1]  ;;  %v1490_v32 = vsel %vm1141_vm14, %v1489_v0, %v1488_v42 }
 0x2f7   :  { %v1094_v20 = vld [vmem:[#allocation4 + $0x6c] sm:$0x1]  ;;  %v1243_v17 = vrot.slane %v1030_v19, 2  ;;  %v1022_v6 = vld [vmem:[#allocation4 + $0x63] sm:$0x1]  ;;  %v1267_v33 = vsel %vm1141_vm14, %v1266_v1, %v1265_v48  ;;  %v1465_v39 = vsel %vm1141_vm14, %v1464_v3, %v1463_v54  ;;  %v2602_v40 = vsel %vm1141_vm14, %v1316_v8, %v1315_v55 }
 0x2f8   :  { %v1441_v24 = vrot.slane %v1094_v20, 2  ;;  %v1086_v25 = vld [vmem:[#allocation4 + $0x6b] sm:$0x1]  ;;  %v1218_v28 = vrot.slane %v1022_v6, 2  ;;  %v1046_v30 = vld [vmem:[#allocation4 + $0x66] sm:$0x1]  ;;  %v1194_v36 = vsel %vm1144_vm15, %v1193_v18, %v1192_v5  ;;  %v1392_v41 = vsel %vm1144_vm15, %v1391_v11, %v1390_v57 }
 0x2f9   :  { %v1416_v29 = vrot.slane %v1086_v25, 2  ;;  %v1110_v31 = vld [vmem:[#allocation4 + $0x6e] sm:$0x1]  ;;  %v1293_v34 = vrot.slane %v1046_v30, 2  ;;  %v1038_v37 = vld [vmem:[#allocation4 + $0x65] sm:$0x1]  ;;  %v1367_v43 = vsel %vm1144_vm15, %v1366_v14, %v1365_v9  ;;  %v1169_v42 = vsel %vm1144_vm15, %v1168_v16, %v1167_v13 }
 0x2fa   :  { %v1491_v35 = vrot.slane %v1110_v31, 2  ;;  %v1102_v38 = vld [vmem:[#allocation4 + $0x6d] sm:$0x1]  ;;  %v1268_v44 = vrot.slane %v1038_v37, 2  ;;  %v2607_v45 = vld [vmem:[#allocation4 + $0x67] sm:$0x1]  ;;  %v1244_v52 = vsel %vm1144_vm15, %v1243_v17, %v1242_v15  ;;  %v1442_v53 = vsel %vm1144_vm15, %v1441_v24, %v1440_v21 }
 0x2fb   :  { %v1466_v46 = vrot.slane %v1102_v38, 2  ;;  %v1318_v47 = vrot.slane %v2607_v45, 2  ;;  %v1506_v48 = vrot.slane %v2594_v23, 7  ;;  %v1219_v54 = vsel %vm1144_vm15, %v1218_v28, %v1217_v22  ;;  %v1114_v62 = vld [vmem:[#allocation4 + $0x2f] sm:$0x1] }
 0x2fc   :  { %v1079_v49 = vld [vmem:[#allocation4 + $0x7a] sm:$0x1]  ;;  %v1071_v50 = vld [vmem:[#allocation4 + $0x79] sm:$0x1]  ;;  %v1095_v51 = vld [vmem:[#allocation4 + $0x7c] sm:$0x1]  ;;  %v1417_v55 = vsel %vm1144_vm15, %v1416_v29, %v1415_v26  ;;  %v1294_v60 = vsel %vm1144_vm15, %v1293_v34, %v1292_v27  ;;  %v1492_v61 = vsel %vm1144_vm15, %v1491_v35, %v1490_v32  ;;  %v1269_v4 = vsel %vm1144_vm15, %v1268_v44, %v1267_v33 }
 0x2fd   :  { %v1015_v56 = vld [vmem:[#allocation4 + $0x72] sm:$0x1]  ;;  %v1393_v57 = vrot.slane %v1079_v49, 1  ;;  %v1007_v58 = vld [vmem:[#allocation4 + $0x71] sm:$0x1]  ;;  %v1368_v59 = vrot.slane %v1071_v50, 1  ;;  %v1467_v12 = vsel %vm1144_vm15, %v1466_v46, %v1465_v39 }
 0x2fe   :  { %v1195_v0 = vrot.slane %v1015_v56, 1  ;;  %v1170_v1 = vrot.slane %v1007_v58, 1  ;;  %v1031_v3 = vld [vmem:[#allocation4 + $0x74] sm:$0x1]  ;;  %v1443_v63 = vrot.slane %v1095_v51, 1  ;;  %v1508_v31 = vrot.slane %v1114_v62, 6 }
 0x2ff   :  { %v1115_v5 = vld [vmem:[#allocation4 + $0x3f] sm:$0x1]  ;;  %v1394_v7 = vsel %vm1147_vm0, %v1393_v57, %v1392_v41  ;;  %v1369_v9 = vsel %vm1147_vm0, %v1368_v59, %v1367_v43  ;;  %v1245_v8 = vrot.slane %v1031_v3, 1  ;;  %v1023_v10 = vld [vmem:[#allocation4 + $0x73] sm:$0x1]  ;;  %v1551_v44 = vld [vmem:[%s2751_s5 + $0x40] sm:$0xff] }
 0x300   :  { %v1087_v11 = vld [vmem:[#allocation4 + $0x7b] sm:$0x1]  ;;  %v1196_v13 = vsel %vm1147_vm0, %v1195_v0, %v1194_v36  ;;  %v1171_v14 = vsel %vm1147_vm0, %v1170_v1, %v1169_v42  ;;  %v1444_v15 = vsel %vm1147_vm0, %v1443_v63, %v1442_v53  ;;  %v1220_v18 = vrot.slane %v1023_v10, 1  ;;  %v1047_v16 = vld [vmem:[#allocation4 + $0x76] sm:$0x1]  ;;  %v1552_v42 = vld [vmem:[%s2751_s5 + $0x48] sm:$0xff] }
 0x301   :  { %v1111_v19 = vld [vmem:[#allocation4 + $0x7e] sm:$0x1]  ;;  %v1992_v20 = vpack.i.bf16 %v1196_v13, %v1394_v7  ;;  %v1987_v21 = vpack.i.bf16 %v1171_v14, %v1369_v9  ;;  %v1246_v22 = vsel %vm1147_vm0, %v1245_v8, %v1244_v52  ;;  %v1418_v23 = vrot.slane %v1087_v11, 1  ;;  %v1039_v17 = vld [vmem:[#allocation4 + $0x75] sm:$0x1] }
 0x302   :  { %v1103_v24 = vld [vmem:[#allocation4 + $0x7d] sm:$0x1]  ;;  %v1112_v6 = vld [vmem:[#allocation4 + $0xf] sm:$0x1]  ;;  %v1117_v26 = vld [vmem:[#allocation4 + $0x5f] sm:$0x1]  ;;  %v1221_v27 = vsel %vm1147_vm0, %v1220_v18, %v1219_v54  ;;  %v2002_v38 = vpack.i.bf16 %v1246_v22, %v1444_v15  ;;  %v1319_v54 = vsel %vm1144_vm15, %v1318_v47, %v2602_v40  ;;  %v1954_v47 = vpack.c.bf16 %v1552_v42, %v1551_v44 }
 0x303   :  { %v1116_v25 = vld [vmem:[#allocation4 + $0x4f] sm:$0x1]  ;;  %v1295_v28 = vrot.slane %v1047_v16, 1  ;;  %v1493_v29 = vrot.slane %v1111_v19, 1  ;;  %v1055_v30 = vld [vmem:[#allocation4 + $0x77] sm:$0x1]  ;;  %1993 = vrot.lane.b32.xlu1 %v1992_v20, %s2027_s4  ;;  %1988 = vrot.lane.b32.xlu0 %v1987_v21, %s2026_s3  ;;  %v1419_v32 = vsel %vm1147_vm0, %v1418_v23, %v1417_v55  ;;  %v1507_v43 = vsel %vm1129_vm10, %v1506_v48, %v1112_v6 }
 0x304   :  { %v1270_v33 = vrot.slane %v1039_v17, 1  ;;  %v1468_v34 = vrot.slane %v1103_v24, 1  ;;  %v1118_v35 = vld [vmem:[#allocation4 + $0x6f] sm:$0x1]  ;;  %v1510_v37 = vrot.slane %v1115_v5, 5  ;;  %v1997_v39 = vpack.i.bf16 %v1221_v27, %v1419_v32  ;;  %s2028_s3 = smov 64   ;;  %1955 = vmatpush3.bf16.msra.mxu0 %v1954_v47 }
 0x305   :  { %v1119_v36 = vld [vmem:[#allocation4 + $0x7f] sm:$0x1]  ;;  %v1320_v41 = vrot.slane %v1055_v30, 1  ;;  %v1296_v46 = vsel %vm1147_vm0, %v1295_v28, %v1294_v60  ;;  %v1494_v49 = vsel %vm1147_vm0, %v1493_v29, %v1492_v61  ;;  %v2640_v52 = vld [vmem:[#allocation4 + $0x10] sm:$0x1]  ;;  %v1509_v55 = vsel %vm1132_vm11, %v1508_v31, %v1507_v43 }
 0x306   :  { %v1271_v50 = vsel %vm1147_vm0, %v1270_v33, %v1269_v4  ;;  %v1469_v51 = vsel %vm1147_vm0, %v1468_v34, %v1467_v12  ;;  %v2642_v53 = vld [vmem:[#allocation4 + $0x20] sm:$0x1]  ;;  %v2644_v48 = vld [vmem:[#allocation4 + $0x30] sm:$0x1]  ;;  %v1512_v56 = vrot.slane %v1116_v25, 4  ;;  %v1514_v57 = vrot.slane %v1117_v26, 3 }
 0x307   :  { %v2651_v58 = vld [vmem:[#allocation4 + $0x40] sm:$0x1]  ;;  %v2653_v59 = vld [vmem:[#allocation4 + $0x50] sm:$0x1]  ;;  %2003 = vrot.lane.b32.xlu1 %v2002_v38, %s2028_s3  ;;  %1998 = vrot.lane.b32.xlu0 %v1997_v39, %s2029_s26  ;;  %v1511_v60 = vsel %vm1135_vm12, %v1510_v37, %v1509_v55  ;;  %v1516_v61 = vrot.slane %v1118_v35, 2  ;;  %v1518_v62 = vrot.slane %v1119_v36, 1  ;;  %v2012_v1 = vpack.i.bf16 %v1296_v46, %v1494_v49 }
 0x308   :  { %v2656_v0 = vld [vmem:[#allocation4 + $0x60] sm:$0x1]  ;;  %v1057_v45 = vld [vmem:[#allocation4 + $0x18] sm:$0x1]  ;;  %v1058_v40 = vld [vmem:[#allocation4 + $0x28] sm:$0x1]  ;;  %v2007_v3 = vpack.i.bf16 %v1271_v50, %v1469_v51  ;;  %v1321_v63 = vsel %vm1147_vm0, %v1320_v41, %v1319_v54  ;;  %v1513_v4 = vsel %vm1138_vm13, %v1512_v56, %v1511_v60 }
 0x309   :  { %v1059_v5 = vld [vmem:[#allocation4 + $0x38] sm:$0x1]  ;;  %v1060_v7 = vld [vmem:[#allocation4 + $0x48] sm:$0x1]  ;;  %v1515_v8 = vsel %vm1141_vm14, %v1514_v57, %v1513_v4  ;;  %v1128_v12 = vrot.slane %v2640_v52, 7  ;;  %v1131_v13 = vrot.slane %v2642_v53, 6 }
 0x30a   :  { %v1061_v9 = vld [vmem:[#allocation4 + $0x58] sm:$0x1]  ;;  %v1056_v10 = vld [vmem:[#allocation4 + $0x8] sm:$0x1]  ;;  %v1134_v14 = vrot.slane %v2644_v48, 5  ;;  %v1569_v15 = vld [vmem:[%s2751_s5 + $0xd0] sm:$0xff]  ;;  %v1517_v18 = vsel %vm1144_vm15, %v1516_v61, %v1515_v8 }
 0x30b   :  { %v1062_v11 = vld [vmem:[#allocation4 + $0x68] sm:$0x1]  ;;  %v1063_v16 = vld [vmem:[#allocation4 + $0x78] sm:$0x1]  ;;  %v1137_v19 = vrot.slane %v2651_v58, 4  ;;  %v1333_v20 = vrot.slane %v1057_v45, 7  ;;  %2013 = vrot.lane.b32.xlu1 %v2012_v1, %s2030_s30  ;;  %2008 = vrot.lane.b32.xlu0 %v2007_v3, %s2031_s10  ;;  %v1519_v17 = vsel %vm1147_vm0, %v1518_v62, %v1517_v18 }
 0x30c   :  { %v1335_v21 = vrot.slane %v1058_v40, 6  ;;  %v992_v22 = vld [vmem:[#allocation4] sm:$0x1]  ;;  %v1570_v23 = vld [vmem:[%s2751_s5 + $0xd8] sm:$0xff]  ;;  %v1140_v24 = vrot.slane %v2653_v59, 3  ;;  %v1337_v6 = vrot.slane %v1059_v5, 5  ;;  %v2017_v28 = vpack.i.bf16 %v1321_v63, %v1519_v17 }
 0x30d   :  { %v1339_v25 = vrot.slane %v1060_v7, 4  ;;  %v1553_v26 = vld [vmem:[%s2751_s5 + $0x50] sm:$0xff]  ;;  %v1554_v27 = vld [vmem:[%s2751_s5 + $0x58] sm:$0xff]  ;;  %v1143_v30 = vrot.slane %v2656_v0, 2  ;;  %v1334_v31 = vsel %vm1129_vm10, %v1333_v20, %v1056_v10  ;;  %v1341_v32 = vrot.slane %v1061_v9, 3  ;;  %v1571_v33 = vld [vmem:[%s2751_s5 + $0xe0] sm:$0xff] }
 0x30e   :  { %v999_v29 = vld [vmem:[#allocation4 + $0x70] sm:$0x1]  ;;  %v1572_v34 = vld [vmem:[%s2751_s5 + $0xe8] sm:$0xff]  ;;  %v1336_v35 = vsel %vm1132_vm11, %v1335_v21, %v1334_v31  ;;  %v1343_v37 = vrot.slane %v1062_v11, 2  ;;  %v1130_v38 = vsel %vm1129_vm10, %v1128_v12, %v992_v22  ;;  %v1956_v39 = vpack.c.bf16 %v1570_v23, %v1569_v15  ;;  %v1555_v36 = vld [vmem:[%s2751_s5 + $0x60] sm:$0xff] }
 0x30f   :  { %v1556_v41 = vld [vmem:[%s2751_s5 + $0x68] sm:$0xff]  ;;  %v1338_v43 = vsel %vm1135_vm12, %v1337_v6, %v1336_v35  ;;  %v1345_v44 = vrot.slane %v1063_v16, 1  ;;  %v1133_v42 = vsel %vm1132_vm11, %v1131_v13, %v1130_v38  ;;  %v1958_v46 = vpack.c.bf16 %v1554_v27, %v1553_v26  ;;  %v1573_v49 = vld [vmem:[%s2751_s5 + $0xf0] sm:$0xff]  ;;  %v1574_v50 = vld [vmem:[%s2751_s5 + $0xf8] sm:$0xff]  ;;  %2018 = vrot.lane.b32.xlu0 %v2017_v28, %s2032_s1 }
 0x310   :  { %v1146_v51 = vrot.slane %v999_v29, 1  ;;  %v1340_v52 = vsel %vm1138_vm13, %v1339_v25, %v1338_v43  ;;  %v1136_v53 = vsel %vm1135_vm12, %v1134_v14, %v1133_v42  ;;  %1957 = vmatprep.subr.bf16.mxu0 %v1956_v39  ;;  %v1960_v48 = vpack.c.bf16 %v1572_v34, %v1571_v33  ;;  %v1653_v57 = vld [vmem:[%s2753_s7] sm:$0xff]  ;;  %v1654_v58 = vld [vmem:[%s2753_s7 + $0x8] sm:$0xff]  ;;  %v1557_v62 = vld [vmem:[%s2751_s5 + $0x70] sm:$0xff] }
 0x311   :  { %v1342_v54 = vsel %vm1141_vm14, %v1341_v32, %v1340_v52  ;;  %v1139_v55 = vsel %vm1138_vm13, %v1137_v19, %v1136_v53  ;;  %1959 = vmatpush3.bf16.msra.mxu0 %v1958_v46  ;;  %v1962_v56 = vpack.c.bf16 %v1556_v41, %v1555_v36  ;;  %v1964_v61 = vpack.c.bf16 %v1574_v50, %v1573_v49  ;;  %v1558_v0 = vld [vmem:[%s2751_s5 + $0x78] sm:$0xff]  ;;  %v1655_v47 = vld [vmem:[%s2753_s7 + $0x10] sm:$0xff]  ;;  %v1777_v42 = vld [vmem:[%s2754_s6] ss:$0 sm:$0xff] }
 0x312   :  { %v1344_v59 = vsel %vm1144_vm15, %v1343_v37, %v1342_v54  ;;  %v1142_v60 = vsel %vm1141_vm14, %v1140_v24, %v1139_v55  ;;  %1961 = vmatprep.subr.bf16.mxu0 %v1960_v48  ;;  %v1656_v1 = vld [vmem:[%s2753_s7 + $0x18] sm:$0xff]  ;;  %v1969_v63 = vpack.c.bf16 %v1654_v58, %v1653_v57  ;;  %v1966_v4 = vpack.c.bf16 %v1558_v0, %v1557_v62  ;;  %v1778_v52 = vld [vmem:[%s2755_s8] ss:$0 sm:$0xff] }
 0x313   :  { %v1346_v45 = vsel %vm1147_vm0, %v1345_v44, %v1344_v59  ;;  %v1145_v40 = vsel %vm1144_vm15, %v1143_v30, %v1142_v60  ;;  %v2033_v5 = vmov 0.0|0.0   ;;  %v1972_v7 = vpack.c.bf16 %v1656_v1, %v1655_v47 }
 0x314   :  { %v1148_v3 = vsel %vm1147_vm0, %v1146_v51, %v1145_v40  ;;  %1968 = vmatprep.subr.bf16.mxu1 %v2033_v5 }
 0x315   :  { %1963 = vmatpush3.bf16.msra.mxu0 %v1962_v56  ;;  %1970 = vmatpush3.bf16.msra.mxu1 %v1969_v63 }
 0x316   :  { %1965 = vmatprep.subr.bf16.mxu0 %v1964_v61  ;;  %1971 = vmatprep.subr.bf16.mxu1 %v2033_v5 }
 0x319   :  { %1967 = vmatpush3.bf16.msra.mxu0 %v1966_v4  ;;  %1973 = vmatpush3.bf16.msra.mxu1 %v1972_v7 }
 0x375   :  { %v1994_v9 = vpop.permute.xlu1 %1993  ;;  %v1989_v8 = vpop.permute.xlu0 %1988 }
 0x376   :  { %v1991_v10 = vunpack.i.h.bf16 %v1989_v8  ;;  %v1990_v11 = vunpack.i.l.bf16 %v1989_v8  ;;  %v1996_v12 = vunpack.i.h.bf16 %v1994_v9  ;;  %v1995_v13 = vunpack.i.l.bf16 %v1994_v9 }
 0x378   :  { %v1523_v14 = vsel %vm739_vm8, %v1148_v3, %v1991_v10  ;;  %v1536_v15 = vsel %vm739_vm8, %v1346_v45, %v1990_v11 }
 0x379   :  { %v2004_v18 = vpop.permute.xlu1 %2003  ;;  %v1999_v16 = vpop.permute.xlu0 %1998  ;;  %v1525_v23 = vsel %vm1524_vm1, %v1523_v14, %v1996_v12  ;;  %v1537_v17 = vsel %vm1524_vm1, %v1536_v15, %v1995_v13 }
 0x37a   :  { %v2001_v19 = vunpack.i.h.bf16 %v1999_v16  ;;  %v2000_v20 = vunpack.i.l.bf16 %v1999_v16  ;;  %v2006_v21 = vunpack.i.h.bf16 %v2004_v18  ;;  %v2005_v22 = vunpack.i.l.bf16 %v2004_v18 }
 0x37c   :  { %v1527_v24 = vsel %vm1526_vm2, %v1525_v23, %v2001_v19  ;;  %v1538_v6 = vsel %vm1526_vm2, %v1537_v17, %v2000_v20 }
 0x37d   :  { %v2014_v25 = vpop.permute.xlu1 %2013  ;;  %v2009_v26 = vpop.permute.xlu0 %2008  ;;  %v1529_v31 = vsel %vm1528_vm3, %v1527_v24, %v2006_v21  ;;  %v1539_v32 = vsel %vm1528_vm3, %v1538_v6, %v2005_v22 }
 0x37e   :  { %v2011_v27 = vunpack.i.h.bf16 %v2009_v26  ;;  %v2010_v28 = vunpack.i.l.bf16 %v2009_v26  ;;  %v2016_v29 = vunpack.i.h.bf16 %v2014_v25  ;;  %v2015_v30 = vunpack.i.l.bf16 %v2014_v25 }
 0x380   :  { %v1531_v33 = vsel %vm1530_vm4, %v1529_v31, %v2011_v27  ;;  %v1540_v34 = vsel %vm1530_vm4, %v1539_v32, %v2010_v28 }
 0x381   :  { %v2019_v35 = vpop.permute.xlu0 %2018  ;;  %v1541_v39 = vsel %vm1532_vm5, %v1540_v34, %v2015_v30  ;;  %v1533_v36 = vsel %vm1532_vm5, %v1531_v33, %v2016_v29 }
 0x382   :  { %v2021_v37 = vunpack.i.h.bf16 %v2019_v35  ;;  %v2020_v38 = vunpack.i.l.bf16 %v2019_v35 }
 0x384   :  { %v1542_v41 = vsel %vm1534_vm6, %v1541_v39, %v2020_v38  ;;  %v1535_v43 = vsel %vm1534_vm6, %v1533_v36, %v2021_v37 }
 0x385   :  { %1646 = vmatprep.mubr.f32.mxu0 %v1542_v41 }
 0x386   :  { %1647 = vmatmul.mubr.f32.vlgmr.msra.gmra.mrb[16].mxu0 %v1535_v43 }
 0x459   :  { %v1849_v44 = vpop.f32.mrb[16].mxu0 }
 0x45a   :  { %v1850_v46 = vpop.f32.mrb[17].mxu0 }
 0x45b   :  { %v1851_v49 = vadd.f32 %v1850_v46, %v1849_v44 }
 0x45d   :  { %v1649_v50 = vadd.f32 %v1851_v49, %v1777_v42 }
 0x45f   :  { %v1652_v51 = vmax.f32 %v1649_v50, 0.0 }
 0x461   :  { %1924 = vmatmul.mubr.msk.f32.vlgmr.msra.gmra.mrb[16].mxu1 %vm1524_vm1, %v1652_v51 }
 0x534   :  { %v1733_v53 = vpop.f32.mrb[16].mxu1 }
 0x535   :  { %v1734_v48 = vadd.f32 %v1778_v52, %v1733_v53  ;;  %v1925_v54 = vpop.f32.mrb[17].mxu1 }
 0x537   :  { %1737 = vst.msk [vmem:[%s2756_s9] sm:$0xff] %vm1524_vm1, %v1734_v48 }

</bundles_post_ra>
